<compile_context>
chip_gen: v7x
topology: tpu7x:2x2x1
jax: 0.10.0
libtpu: 0.0.40
codegen_flags: <defaults>
</compile_context>

<pallas_src>
import functools
import math

import jax
import jax.numpy as jnp
from jax.experimental import pallas as pl
from jax.experimental.pallas import tpu as pltpu


def _mha_kernel(q_ref, k_ref, v_ref,
                wq_ref, bq_ref, wk_ref, bk_ref, wv_ref, bv_ref,
                wo_ref, bo_ref,
                o_ref,
                ctx_ref,
                *, bt, lq, lk, lv, heads, head_dim, embed_size, compute_dtype):
    E = embed_size
    D = head_dim
    cdt = compute_dtype

    # 2-D token slabs straight from the BlockSpec (no in-kernel flatten).
    q2 = q_ref[...].astype(cdt)                      # (bt*lq, E)
    k2 = k_ref[...].astype(cdt)                      # (bt*lk, E)
    v2 = v_ref[...].astype(cdt)                      # (bt*lv, E)

    wq = wq_ref[...].astype(cdt)
    wk = wk_ref[...].astype(cdt)
    wv = wv_ref[...].astype(cdt)

    # PyTorch: softmax(energy / sqrt(embed_size)); fold scale into qp once.
    scale = 1.0 / math.sqrt(float(E))

    qp = (jnp.dot(q2, wq, preferred_element_type=jnp.float32)
          + bq_ref[...]) * scale                     # (bt*lq, E) f32
    kp = jnp.dot(k2, wk, preferred_element_type=jnp.float32) + bk_ref[...]
    vp = jnp.dot(v2, wv, preferred_element_type=jnp.float32) + bv_ref[...]

    # Per-head attention, batched over the bt batch rows in this block.
    # Context slabs are written to a VMEM scratch so the fc_out projection
    # below is a single K=E MXU matmul (no per-head K=head_dim matmuls).
    for h in range(heads):
        lo = h * D
        qh = qp[:, lo:lo + D].reshape(bt, lq, D).astype(cdt)
        kh = kp[:, lo:lo + D].reshape(bt, lk, D).astype(cdt)
        vh = vp[:, lo:lo + D].reshape(bt, lv, D).astype(cdt)

        s = jnp.einsum('bqd,bkd->bqk', qh, kh,
                       preferred_element_type=jnp.float32)        # (bt, lq, lk)

        # softmax over keys, kept in f32.
        s = s - jnp.max(s, axis=-1, keepdims=True)
        p = jnp.exp(s)
        p = p * pl.reciprocal(jnp.sum(p, axis=-1, keepdims=True), approx=True)

        ctx_h = jnp.einsum('bqk,bkd->bqd', p.astype(cdt), vh,
                           preferred_element_type=jnp.float32)    # (bt, lq, D)
        ctx_ref[:, lo:lo + D] = ctx_h.reshape(bt * lq, D)

    # Single fused output projection: (tokens, E) @ (E, E).
    ctx = ctx_ref[...].astype(cdt)
    out = jnp.dot(ctx, wo_ref[...].astype(cdt),
                  preferred_element_type=jnp.float32) + bo_ref[...]
    o_ref[...] = out.astype(o_ref.dtype)


def _pick_batch_block(n, lq, *, target_rows=256, min_steps=2):
    """Pick batch rows per grid step: ~target_rows token rows to feed the MXU,
    at least `min_steps` grid steps when possible (v7x has 2 TensorCores), and
    a sublane-aligned row block. Awkward N is handled by padding, not bt=1."""
    bt = max(1, min(n, max(1, target_rows // max(lq, 1))))
    if n >= min_steps:
        bt = min(bt, -(-n // min_steps))
    if (bt * lq) % 8 != 0:
        for cand in range(bt, 0, -1):
            if (cand * lq) % 8 == 0:
                bt = cand
                break
        else:
            bt = n            # single full-extent block (block == array dim)
    n_pad = -(-n // bt) * bt  # pad batch up to a multiple of bt
    return bt, n_pad


def global_attention_layer(query, values, keys, params, *, heads,
                           compute_dtype=jnp.bfloat16):
    """Pallas implementation of GlobalAttentionLayer.forward (mask=None, eval)."""
    N, Lq, E = query.shape
    _, Lv, _ = values.shape
    _, Lk, _ = keys.shape
    assert E % heads == 0, "embed_size must be divisible by heads"
    assert Lk == Lv, "key_len must equal value_len"
    D = E // heads

    wq, bq, wk, bk, wv, bv, wo, bo = params

    bt, n_pad = _pick_batch_block(N, Lq)
    nb = n_pad // bt
    if n_pad != N:
        pad = ((0, n_pad - N), (0, 0), (0, 0))
        query = jnp.pad(query, pad)
        keys = jnp.pad(keys, pad)
        values = jnp.pad(values, pad)

    # Wrapper-side flatten: 2-D token slabs, so the kernel never reshapes the
    # sublane dimension for the projections.
    q2 = query.reshape(n_pad * Lq, E)
    k2 = keys.reshape(n_pad * Lk, E)
    v2 = values.reshape(n_pad * Lv, E)

    kernel = functools.partial(
        _mha_kernel, bt=bt, lq=Lq, lk=Lk, lv=Lv, heads=heads, head_dim=D,
        embed_size=E, compute_dtype=compute_dtype)

    # Grid-invariant weights/biases: keep them resident in VMEM, untiled and
    # not double-buffered by the pipeline.
    w_spec = pl.BlockSpec(memory_space=pltpu.MemorySpace.VMEM)
    b_spec = pl.BlockSpec(memory_space=pltpu.MemorySpace.VMEM)

    tokens_q = n_pad * Lq
    tokens_k = n_pad * Lk
    flops = (2 * (tokens_q + 2 * tokens_k) * E * E        # q/k/v projections
             + 2 * tokens_q * E * E                        # fc_out projection
             + 2 * 2 * n_pad * heads * Lq * Lk * D)        # QK^T and PV
    transcendentals = n_pad * heads * Lq * Lk              # exp in softmax
    bytes_accessed = 4 * ((tokens_q + 2 * tokens_k) * E    # inputs
                          + 4 * E * E + 4 * E              # weights + biases
                          + tokens_q * E)                  # output

    out2 = pl.pallas_call(
        kernel,
        out_shape=jax.ShapeDtypeStruct((tokens_q, E), query.dtype),
        grid_spec=pltpu.PrefetchScalarGridSpec(
            num_scalar_prefetch=0,
            grid=(nb,),
            in_specs=[
                pl.BlockSpec((bt * Lq, E), lambda n: (n, 0)),   # query rows
                pl.BlockSpec((bt * Lk, E), lambda n: (n, 0)),   # key rows
                pl.BlockSpec((bt * Lv, E), lambda n: (n, 0)),   # value rows
                w_spec, b_spec,                                 # queries proj
                w_spec, b_spec,                                 # keys proj
                w_spec, b_spec,                                 # values proj
                w_spec, b_spec,                                 # fc_out
            ],
            out_specs=pl.BlockSpec((bt * Lq, E), lambda n: (n, 0)),
            scratch_shapes=[pltpu.VMEM((bt * Lq, E), jnp.float32)],  # ctx slab
        ),
        compiler_params=pltpu.CompilerParams(
            dimension_semantics=("parallel",),
            vmem_limit_bytes=64 * 1024 * 1024),
        cost_estimate=pl.CostEstimate(flops=flops,
                                      transcendentals=transcendentals,
                                      bytes_accessed=bytes_accessed),
    )(q2, k2, v2, wq, bq, wk, bk, wv, bv, wo, bo)

    return out2.reshape(n_pad, Lq, E)[:N]


def _reference(query, values, keys, params, *, heads):
    """Pure-JAX reference reproducing the PyTorch forward (mask=None, eval)."""
    N, Lq, E = query.shape
    D = E // heads
    wq, bq, wk, bk, wv, bv, wo, bo = params
    vp = values @ wv + bv
    kp = keys @ wk + bk
    qp = query @ wq + bq
    vp = vp.reshape(N, -1, heads, D)
    kp = kp.reshape(N, -1, heads, D)
    qp = qp.reshape(N, Lq, heads, D)
    energy = jnp.einsum('nqhd,nkhd->nhqk', qp, kp)
    attn = jax.nn.softmax(energy / math.sqrt(E), axis=3)
    out = jnp.einsum('nhql,nlhd->nqhd', attn, vp).reshape(N, Lq, E)
    return out @ wo + bo


def _init_params(key, embed_size):
    """Deterministic init mirroring nn.Linear shapes; stored as (in, out) + (1, out)."""
    ks = jax.random.split(key, 8)
    bound = 1.0 / math.sqrt(embed_size)

    def linear(kw, kb):
        w = jax.random.uniform(kw, (embed_size, embed_size), jnp.float32, -bound, bound)
        b = jax.random.uniform(kb, (1, embed_size), jnp.float32, -bound, bound)
        return w, b

    wv, bv = linear(ks[0], ks[1])
    wk, bk = linear(ks[2], ks[3])
    wq, bq = linear(ks[4], ks[5])
    wo, bo = linear(ks[6], ks[7])
    return (wq, bq, wk, bk, wv, bv, wo, bo)


if __name__ == "__main__":
    N, L, E, H = 2, 8, 32, 4          # batch, seq, embed_size, heads

    root = jax.random.PRNGKey(0)
    kq, kk, kv, kp = jax.random.split(root, 4)
    query = jax.random.normal(kq, (N, L, E), jnp.float32)
    keys = jax.random.normal(kk, (N, L, E), jnp.float32)
    values = jax.random.normal(kv, (N, L, E), jnp.float32)
    params = _init_params(kp, E)

    ref = _reference(query, values, keys, params, heads=H)

    # Default path: bf16 MXU operands, f32 accumulation / softmax.
    out_bf16 = global_attention_layer(query, values, keys, params, heads=H)
    out_bf16 = jax.block_until_ready(out_bf16)
    assert out_bf16.shape == (N, L, E)
    assert jnp.allclose(out_bf16, ref, atol=5e-2, rtol=5e-2), "bf16 mismatch vs reference"

    # f32 path for tight parity (only the approx reciprocal differs).
    out_f32 = global_attention_layer(query, values, keys, params, heads=H,
                                     compute_dtype=jnp.float32)
    out_f32 = jax.block_until_ready(out_f32)
    assert jnp.allclose(out_f32, ref, atol=5e-3, rtol=5e-3), "f32 mismatch vs reference"

    print("KERNEL_OK")
</pallas_src>

<mosaic_0001>
module attributes {stable_mosaic.version = 11 : i64} {
  func.func @_mha_kernel(%arg0: i32, %arg1: memref<8x32xf32, #tpu.memory_space<vmem>>, %arg2: memref<8x32xf32, #tpu.memory_space<vmem>>, %arg3: memref<8x32xf32, #tpu.memory_space<vmem>>, %arg4: memref<32x32xf32, #tpu.memory_space<vmem>>, %arg5: memref<1x32xf32, #tpu.memory_space<vmem>>, %arg6: memref<32x32xf32, #tpu.memory_space<vmem>>, %arg7: memref<1x32xf32, #tpu.memory_space<vmem>>, %arg8: memref<32x32xf32, #tpu.memory_space<vmem>>, %arg9: memref<1x32xf32, #tpu.memory_space<vmem>>, %arg10: memref<32x32xf32, #tpu.memory_space<vmem>>, %arg11: memref<1x32xf32, #tpu.memory_space<vmem>>, %arg12: memref<8x32xf32, #tpu.memory_space<vmem>>, %arg13: memref<8x32xf32, #tpu.memory_space<vmem>>) attributes {dimension_semantics = [#tpu.dimension_semantics<parallel>], iteration_bounds = array<i64: 2>, scalar_prefetch = 0 : i64, scratch_operands = 1 : i64, tpu.core_type = #tpu.core_type<tc>, window_params = [{transform_indices = @transform_0, window_bounds = array<i64: 8, 32>}, {transform_indices = @transform_1, window_bounds = array<i64: 8, 32>}, {transform_indices = @transform_2, window_bounds = array<i64: 8, 32>}, {pipeline_mode = #tpu.pipeline_mode<synchronous>, transform_indices = @transform_3, window_bounds = array<i64: 32, 32>}, {pipeline_mode = #tpu.pipeline_mode<synchronous>, transform_indices = @transform_4, window_bounds = array<i64: 1, 32>}, {pipeline_mode = #tpu.pipeline_mode<synchronous>, transform_indices = @transform_5, window_bounds = array<i64: 32, 32>}, {pipeline_mode = #tpu.pipeline_mode<synchronous>, transform_indices = @transform_6, window_bounds = array<i64: 1, 32>}, {pipeline_mode = #tpu.pipeline_mode<synchronous>, transform_indices = @transform_7, window_bounds = array<i64: 32, 32>}, {pipeline_mode = #tpu.pipeline_mode<synchronous>, transform_indices = @transform_8, window_bounds = array<i64: 1, 32>}, {pipeline_mode = #tpu.pipeline_mode<synchronous>, transform_indices = @transform_9, window_bounds = array<i64: 32, 32>}, {pipeline_mode = #tpu.pipeline_mode<synchronous>, transform_indices = @transform_10, window_bounds = array<i64: 1, 32>}, {transform_indices = @transform_11, window_bounds = array<i64: 8, 32>}]} {
    %c0 = arith.constant 0 : index
    %c0_0 = arith.constant 0 : index
    %0 = vector.load %arg1[%c0, %c0_0] : memref<8x32xf32, #tpu.memory_space<vmem>>, vector<8x32xf32>
    %1 = arith.truncf %0 : vector<8x32xf32> to vector<8x32xbf16>
    %c0_1 = arith.constant 0 : index
    %c0_2 = arith.constant 0 : index
    %2 = vector.load %arg2[%c0_1, %c0_2] : memref<8x32xf32, #tpu.memory_space<vmem>>, vector<8x32xf32>
    %3 = arith.truncf %2 : vector<8x32xf32> to vector<8x32xbf16>
    %c0_3 = arith.constant 0 : index
    %c0_4 = arith.constant 0 : index
    %4 = vector.load %arg3[%c0_3, %c0_4] : memref<8x32xf32, #tpu.memory_space<vmem>>, vector<8x32xf32>
    %5 = arith.truncf %4 : vector<8x32xf32> to vector<8x32xbf16>
    %c0_5 = arith.constant 0 : index
    %c0_6 = arith.constant 0 : index
    %6 = vector.load %arg4[%c0_5, %c0_6] : memref<32x32xf32, #tpu.memory_space<vmem>>, vector<32x32xf32>
    %7 = arith.truncf %6 : vector<32x32xf32> to vector<32x32xbf16>
    %c0_7 = arith.constant 0 : index
    %c0_8 = arith.constant 0 : index
    %8 = vector.load %arg6[%c0_7, %c0_8] : memref<32x32xf32, #tpu.memory_space<vmem>>, vector<32x32xf32>
    %9 = arith.truncf %8 : vector<32x32xf32> to vector<32x32xbf16>
    %c0_9 = arith.constant 0 : index
    %c0_10 = arith.constant 0 : index
    %10 = vector.load %arg8[%c0_9, %c0_10] : memref<32x32xf32, #tpu.memory_space<vmem>>, vector<32x32xf32>
    %11 = arith.truncf %10 : vector<32x32xf32> to vector<32x32xbf16>
    %cst = arith.constant dense<0.000000e+00> : vector<8x32xf32>
    %12 = tpu.matmul %1, %7, %cst {dimension_numbers = #tpu.dot_dimension_numbers<[1], [0], [0], [1], [0, 0, 1, 1], [], []>} : vector<8x32xbf16>, vector<32x32xbf16>, vector<8x32xf32> -> vector<8x32xf32>
    %c0_11 = arith.constant 0 : index
    %c0_12 = arith.constant 0 : index
    %13 = vector.load %arg5[%c0_11, %c0_12] : memref<1x32xf32, #tpu.memory_space<vmem>>, vector<1x32xf32>
    %14 = vector.broadcast %13 : vector<1x32xf32> to vector<8x32xf32>
    %15 = arith.addf %12, %14 : vector<8x32xf32>
    %cst_13 = arith.constant 0.176776692 : f32
    %16 = vector.broadcast %cst_13 : f32 to vector<8x32xf32>
    %17 = arith.mulf %15, %16 : vector<8x32xf32>
    %cst_14 = arith.constant dense<0.000000e+00> : vector<8x32xf32>
    %18 = tpu.matmul %3, %9, %cst_14 {dimension_numbers = #tpu.dot_dimension_numbers<[1], [0], [0], [1], [0, 0, 1, 1], [], []>} : vector<8x32xbf16>, vector<32x32xbf16>, vector<8x32xf32> -> vector<8x32xf32>
    %c0_15 = arith.constant 0 : index
    %c0_16 = arith.constant 0 : index
    %19 = vector.load %arg7[%c0_15, %c0_16] : memref<1x32xf32, #tpu.memory_space<vmem>>, vector<1x32xf32>
    %20 = vector.broadcast %19 : vector<1x32xf32> to vector<8x32xf32>
    %21 = arith.addf %18, %20 : vector<8x32xf32>
    %cst_17 = arith.constant dense<0.000000e+00> : vector<8x32xf32>
    %22 = tpu.matmul %5, %11, %cst_17 {dimension_numbers = #tpu.dot_dimension_numbers<[1], [0], [0], [1], [0, 0, 1, 1], [], []>} : vector<8x32xbf16>, vector<32x32xbf16>, vector<8x32xf32> -> vector<8x32xf32>
    %c0_18 = arith.constant 0 : index
    %c0_19 = arith.constant 0 : index
    %23 = vector.load %arg9[%c0_18, %c0_19] : memref<1x32xf32, #tpu.memory_space<vmem>>, vector<1x32xf32>
    %24 = vector.broadcast %23 : vector<1x32xf32> to vector<8x32xf32>
    %25 = arith.addf %22, %24 : vector<8x32xf32>
    %26 = vector.extract_strided_slice %17 {offsets = [0, 0], sizes = [8, 8], strides = [1, 1]} : vector<8x32xf32> to vector<8x8xf32>
    %27 = vector.shape_cast %26 : vector<8x8xf32> to vector<1x8x8xf32>
    %28 = arith.truncf %27 : vector<1x8x8xf32> to vector<1x8x8xbf16>
    %29 = vector.extract_strided_slice %21 {offsets = [0, 0], sizes = [8, 8], strides = [1, 1]} : vector<8x32xf32> to vector<8x8xf32>
    %30 = vector.shape_cast %29 : vector<8x8xf32> to vector<1x8x8xf32>
    %31 = arith.truncf %30 : vector<1x8x8xf32> to vector<1x8x8xbf16>
    %32 = vector.extract_strided_slice %25 {offsets = [0, 0], sizes = [8, 8], strides = [1, 1]} : vector<8x32xf32> to vector<8x8xf32>
    %33 = vector.shape_cast %32 : vector<8x8xf32> to vector<1x8x8xf32>
    %34 = arith.truncf %33 : vector<1x8x8xf32> to vector<1x8x8xbf16>
    "tpu.trace_start"() <{level = 10 : i32, message = "bqd,bkd->bqk"}> : () -> ()
    %cst_20 = arith.constant dense<0.000000e+00> : vector<1x8x8xf32>
    %35 = tpu.matmul %28, %31, %cst_20 {dimension_numbers = #tpu.dot_dimension_numbers<[2], [2], [1], [1], [0, 0, 0, 1, 1, 1], [0], [0]>} : vector<1x8x8xbf16>, vector<1x8x8xbf16>, vector<1x8x8xf32> -> vector<1x8x8xf32>
    "tpu.trace_stop"() : () -> ()
    %cst_21 = arith.constant dense<0xFF800000> : vector<1x8xf32>
    %36 = vector.multi_reduction <maximumf>, %35, %cst_21 [2] : vector<1x8x8xf32> to vector<1x8xf32>
    %37 = vector.shape_cast %36 : vector<1x8xf32> to vector<1x8x1xf32>
    %38 = vector.broadcast %37 : vector<1x8x1xf32> to vector<1x8x8xf32>
    %39 = arith.subf %35, %38 : vector<1x8x8xf32>
    %40 = math.exp %39 : vector<1x8x8xf32>
    %cst_22 = arith.constant dense<0.000000e+00> : vector<1x8xf32>
    %41 = vector.multi_reduction <add>, %40, %cst_22 [2] : vector<1x8x8xf32> to vector<1x8xf32>
    %42 = vector.shape_cast %41 : vector<1x8xf32> to vector<1x8x1xf32>
    %43 = tpu.reciprocal %42 {approx = true} : vector<1x8x1xf32> -> vector<1x8x1xf32>
    %44 = vector.broadcast %43 : vector<1x8x1xf32> to vector<1x8x8xf32>
    %45 = arith.mulf %40, %44 : vector<1x8x8xf32>
    %46 = arith.truncf %45 : vector<1x8x8xf32> to vector<1x8x8xbf16>
    "tpu.trace_start"() <{level = 10 : i32, message = "bqk,bkd->bqd"}> : () -> ()
    %cst_23 = arith.constant dense<0.000000e+00> : vector<1x8x8xf32>
    %47 = tpu.matmul %46, %34, %cst_23 {dimension_numbers = #tpu.dot_dimension_numbers<[2], [1], [1], [2], [0, 0, 0, 1, 1, 2], [0], [0]>} : vector<1x8x8xbf16>, vector<1x8x8xbf16>, vector<1x8x8xf32> -> vector<1x8x8xf32>
    "tpu.trace_stop"() : () -> ()
    %48 = vector.shape_cast %47 : vector<1x8x8xf32> to vector<8x8xf32>
    %c0_24 = arith.constant 0 : index
    %c0_25 = arith.constant 0 : index
    %49 = vector.load %arg13[%c0_24, %c0_25] : memref<8x32xf32, #tpu.memory_space<vmem>>, vector<8x8xf32>
    tpu.vector_store %arg13[%c0_24, %c0_25], %48 {strides = array<i32>} : memref<8x32xf32, #tpu.memory_space<vmem>>, vector<8x8xf32>,
    %50 = vector.extract_strided_slice %17 {offsets = [0, 8], sizes = [8, 8], strides = [1, 1]} : vector<8x32xf32> to vector<8x8xf32>
    %51 = vector.shape_cast %50 : vector<8x8xf32> to vector<1x8x8xf32>
    %52 = arith.truncf %51 : vector<1x8x8xf32> to vector<1x8x8xbf16>
    %53 = vector.extract_strided_slice %21 {offsets = [0, 8], sizes = [8, 8], strides = [1, 1]} : vector<8x32xf32> to vector<8x8xf32>
    %54 = vector.shape_cast %53 : vector<8x8xf32> to vector<1x8x8xf32>
    %55 = arith.truncf %54 : vector<1x8x8xf32> to vector<1x8x8xbf16>
    %56 = vector.extract_strided_slice %25 {offsets = [0, 8], sizes = [8, 8], strides = [1, 1]} : vector<8x32xf32> to vector<8x8xf32>
    %57 = vector.shape_cast %56 : vector<8x8xf32> to vector<1x8x8xf32>
    %58 = arith.truncf %57 : vector<1x8x8xf32> to vector<1x8x8xbf16>
    "tpu.trace_start"() <{level = 10 : i32, message = "bqd,bkd->bqk"}> : () -> ()
    %cst_26 = arith.constant dense<0.000000e+00> : vector<1x8x8xf32>
    %59 = tpu.matmul %52, %55, %cst_26 {dimension_numbers = #tpu.dot_dimension_numbers<[2], [2], [1], [1], [0, 0, 0, 1, 1, 1], [0], [0]>} : vector<1x8x8xbf16>, vector<1x8x8xbf16>, vector<1x8x8xf32> -> vector<1x8x8xf32>
    "tpu.trace_stop"() : () -> ()
    %cst_27 = arith.constant dense<0xFF800000> : vector<1x8xf32>
    %60 = vector.multi_reduction <maximumf>, %59, %cst_27 [2] : vector<1x8x8xf32> to vector<1x8xf32>
    %61 = vector.shape_cast %60 : vector<1x8xf32> to vector<1x8x1xf32>
    %62 = vector.broadcast %61 : vector<1x8x1xf32> to vector<1x8x8xf32>
    %63 = arith.subf %59, %62 : vector<1x8x8xf32>
    %64 = math.exp %63 : vector<1x8x8xf32>
    %cst_28 = arith.constant dense<0.000000e+00> : vector<1x8xf32>
    %65 = vector.multi_reduction <add>, %64, %cst_28 [2] : vector<1x8x8xf32> to vector<1x8xf32>
    %66 = vector.shape_cast %65 : vector<1x8xf32> to vector<1x8x1xf32>
    %67 = tpu.reciprocal %66 {approx = true} : vector<1x8x1xf32> -> vector<1x8x1xf32>
    %68 = vector.broadcast %67 : vector<1x8x1xf32> to vector<1x8x8xf32>
    %69 = arith.mulf %64, %68 : vector<1x8x8xf32>
    %70 = arith.truncf %69 : vector<1x8x8xf32> to vector<1x8x8xbf16>
    "tpu.trace_start"() <{level = 10 : i32, message = "bqk,bkd->bqd"}> : () -> ()
    %cst_29 = arith.constant dense<0.000000e+00> : vector<1x8x8xf32>
    %71 = tpu.matmul %70, %58, %cst_29 {dimension_numbers = #tpu.dot_dimension_numbers<[2], [1], [1], [2], [0, 0, 0, 1, 1, 2], [0], [0]>} : vector<1x8x8xbf16>, vector<1x8x8xbf16>, vector<1x8x8xf32> -> vector<1x8x8xf32>
    "tpu.trace_stop"() : () -> ()
    %72 = vector.shape_cast %71 : vector<1x8x8xf32> to vector<8x8xf32>
    %c0_30 = arith.constant 0 : index
    %c8 = arith.constant 8 : index
    %73 = vector.load %arg13[%c0_30, %c8] : memref<8x32xf32, #tpu.memory_space<vmem>>, vector<8x8xf32>
    tpu.vector_store %arg13[%c0_30, %c8], %72 {strides = array<i32>} : memref<8x32xf32, #tpu.memory_space<vmem>>, vector<8x8xf32>,
    %74 = vector.extract_strided_slice %17 {offsets = [0, 16], sizes = [8, 8], strides = [1, 1]} : vector<8x32xf32> to vector<8x8xf32>
    %75 = vector.shape_cast %74 : vector<8x8xf32> to vector<1x8x8xf32>
    %76 = arith.truncf %75 : vector<1x8x8xf32> to vector<1x8x8xbf16>
    %77 = vector.extract_strided_slice %21 {offsets = [0, 16], sizes = [8, 8], strides = [1, 1]} : vector<8x32xf32> to vector<8x8xf32>
    %78 = vector.shape_cast %77 : vector<8x8xf32> to vector<1x8x8xf32>
    %79 = arith.truncf %78 : vector<1x8x8xf32> to vector<1x8x8xbf16>
    %80 = vector.extract_strided_slice %25 {offsets = [0, 16], sizes = [8, 8], strides = [1, 1]} : vector<8x32xf32> to vector<8x8xf32>
    %81 = vector.shape_cast %80 : vector<8x8xf32> to vector<1x8x8xf32>
    %82 = arith.truncf %81 : vector<1x8x8xf32> to vector<1x8x8xbf16>
    "tpu.trace_start"() <{level = 10 : i32, message = "bqd,bkd->bqk"}> : () -> ()
    %cst_31 = arith.constant dense<0.000000e+00> : vector<1x8x8xf32>
    %83 = tpu.matmul %76, %79, %cst_31 {dimension_numbers = #tpu.dot_dimension_numbers<[2], [2], [1], [1], [0, 0, 0, 1, 1, 1], [0], [0]>} : vector<1x8x8xbf16>, vector<1x8x8xbf16>, vector<1x8x8xf32> -> vector<1x8x8xf32>
    "tpu.trace_stop"() : () -> ()
    %cst_32 = arith.constant dense<0xFF800000> : vector<1x8xf32>
    %84 = vector.multi_reduction <maximumf>, %83, %cst_32 [2] : vector<1x8x8xf32> to vector<1x8xf32>
    %85 = vector.shape_cast %84 : vector<1x8xf32> to vector<1x8x1xf32>
    %86 = vector.broadcast %85 : vector<1x8x1xf32> to vector<1x8x8xf32>
    %87 = arith.subf %83, %86 : vector<1x8x8xf32>
    %88 = math.exp %87 : vector<1x8x8xf32>
    %cst_33 = arith.constant dense<0.000000e+00> : vector<1x8xf32>
    %89 = vector.multi_reduction <add>, %88, %cst_33 [2] : vector<1x8x8xf32> to vector<1x8xf32>
    %90 = vector.shape_cast %89 : vector<1x8xf32> to vector<1x8x1xf32>
    %91 = tpu.reciprocal %90 {approx = true} : vector<1x8x1xf32> -> vector<1x8x1xf32>
    %92 = vector.broadcast %91 : vector<1x8x1xf32> to vector<1x8x8xf32>
    %93 = arith.mulf %88, %92 : vector<1x8x8xf32>
    %94 = arith.truncf %93 : vector<1x8x8xf32> to vector<1x8x8xbf16>
    "tpu.trace_start"() <{level = 10 : i32, message = "bqk,bkd->bqd"}> : () -> ()
    %cst_34 = arith.constant dense<0.000000e+00> : vector<1x8x8xf32>
    %95 = tpu.matmul %94, %82, %cst_34 {dimension_numbers = #tpu.dot_dimension_numbers<[2], [1], [1], [2], [0, 0, 0, 1, 1, 2], [0], [0]>} : vector<1x8x8xbf16>, vector<1x8x8xbf16>, vector<1x8x8xf32> -> vector<1x8x8xf32>
    "tpu.trace_stop"() : () -> ()
    %96 = vector.shape_cast %95 : vector<1x8x8xf32> to vector<8x8xf32>
    %c0_35 = arith.constant 0 : index
    %c16 = arith.constant 16 : index
    %97 = vector.load %arg13[%c0_35, %c16] : memref<8x32xf32, #tpu.memory_space<vmem>>, vector<8x8xf32>
    tpu.vector_store %arg13[%c0_35, %c16], %96 {strides = array<i32>} : memref<8x32xf32, #tpu.memory_space<vmem>>, vector<8x8xf32>,
    %98 = vector.extract_strided_slice %17 {offsets = [0, 24], sizes = [8, 8], strides = [1, 1]} : vector<8x32xf32> to vector<8x8xf32>
    %99 = vector.shape_cast %98 : vector<8x8xf32> to vector<1x8x8xf32>
    %100 = arith.truncf %99 : vector<1x8x8xf32> to vector<1x8x8xbf16>
    %101 = vector.extract_strided_slice %21 {offsets = [0, 24], sizes = [8, 8], strides = [1, 1]} : vector<8x32xf32> to vector<8x8xf32>
    %102 = vector.shape_cast %101 : vector<8x8xf32> to vector<1x8x8xf32>
    %103 = arith.truncf %102 : vector<1x8x8xf32> to vector<1x8x8xbf16>
    %104 = vector.extract_strided_slice %25 {offsets = [0, 24], sizes = [8, 8], strides = [1, 1]} : vector<8x32xf32> to vector<8x8xf32>
    %105 = vector.shape_cast %104 : vector<8x8xf32> to vector<1x8x8xf32>
    %106 = arith.truncf %105 : vector<1x8x8xf32> to vector<1x8x8xbf16>
    "tpu.trace_start"() <{level = 10 : i32, message = "bqd,bkd->bqk"}> : () -> ()
    %cst_36 = arith.constant dense<0.000000e+00> : vector<1x8x8xf32>
    %107 = tpu.matmul %100, %103, %cst_36 {dimension_numbers = #tpu.dot_dimension_numbers<[2], [2], [1], [1], [0, 0, 0, 1, 1, 1], [0], [0]>} : vector<1x8x8xbf16>, vector<1x8x8xbf16>, vector<1x8x8xf32> -> vector<1x8x8xf32>
    "tpu.trace_stop"() : () -> ()
    %cst_37 = arith.constant dense<0xFF800000> : vector<1x8xf32>
    %108 = vector.multi_reduction <maximumf>, %107, %cst_37 [2] : vector<1x8x8xf32> to vector<1x8xf32>
    %109 = vector.shape_cast %108 : vector<1x8xf32> to vector<1x8x1xf32>
    %110 = vector.broadcast %109 : vector<1x8x1xf32> to vector<1x8x8xf32>
    %111 = arith.subf %107, %110 : vector<1x8x8xf32>
    %112 = math.exp %111 : vector<1x8x8xf32>
    %cst_38 = arith.constant dense<0.000000e+00> : vector<1x8xf32>
    %113 = vector.multi_reduction <add>, %112, %cst_38 [2] : vector<1x8x8xf32> to vector<1x8xf32>
    %114 = vector.shape_cast %113 : vector<1x8xf32> to vector<1x8x1xf32>
    %115 = tpu.reciprocal %114 {approx = true} : vector<1x8x1xf32> -> vector<1x8x1xf32>
    %116 = vector.broadcast %115 : vector<1x8x1xf32> to vector<1x8x8xf32>
    %117 = arith.mulf %112, %116 : vector<1x8x8xf32>
    %118 = arith.truncf %117 : vector<1x8x8xf32> to vector<1x8x8xbf16>
    "tpu.trace_start"() <{level = 10 : i32, message = "bqk,bkd->bqd"}> : () -> ()
    %cst_39 = arith.constant dense<0.000000e+00> : vector<1x8x8xf32>
    %119 = tpu.matmul %118, %106, %cst_39 {dimension_numbers = #tpu.dot_dimension_numbers<[2], [1], [1], [2], [0, 0, 0, 1, 1, 2], [0], [0]>} : vector<1x8x8xbf16>, vector<1x8x8xbf16>, vector<1x8x8xf32> -> vector<1x8x8xf32>
    "tpu.trace_stop"() : () -> ()
    %120 = vector.shape_cast %119 : vector<1x8x8xf32> to vector<8x8xf32>
    %c0_40 = arith.constant 0 : index
    %c24 = arith.constant 24 : index
    %121 = vector.load %arg13[%c0_40, %c24] : memref<8x32xf32, #tpu.memory_space<vmem>>, vector<8x8xf32>
    tpu.vector_store %arg13[%c0_40, %c24], %120 {strides = array<i32>} : memref<8x32xf32, #tpu.memory_space<vmem>>, vector<8x8xf32>,
    %c0_41 = arith.constant 0 : index
    %c0_42 = arith.constant 0 : index
    %122 = vector.load %arg13[%c0_41, %c0_42] : memref<8x32xf32, #tpu.memory_space<vmem>>, vector<8x32xf32>
    %123 = arith.truncf %122 : vector<8x32xf32> to vector<8x32xbf16>
    %c0_43 = arith.constant 0 : index
    %c0_44 = arith.constant 0 : index
    %124 = vector.load %arg10[%c0_43, %c0_44] : memref<32x32xf32, #tpu.memory_space<vmem>>, vector<32x32xf32>
    %125 = arith.truncf %124 : vector<32x32xf32> to vector<32x32xbf16>
    %cst_45 = arith.constant dense<0.000000e+00> : vector<8x32xf32>
    %126 = tpu.matmul %123, %125, %cst_45 {dimension_numbers = #tpu.dot_dimension_numbers<[1], [0], [0], [1], [0, 0, 1, 1], [], []>} : vector<8x32xbf16>, vector<32x32xbf16>, vector<8x32xf32> -> vector<8x32xf32>
    %c0_46 = arith.constant 0 : index
    %c0_47 = arith.constant 0 : index
    %127 = vector.load %arg11[%c0_46, %c0_47] : memref<1x32xf32, #tpu.memory_space<vmem>>, vector<1x32xf32>
    %128 = vector.broadcast %127 : vector<1x32xf32> to vector<8x32xf32>
    %129 = arith.addf %126, %128 : vector<8x32xf32>
    %c0_48 = arith.constant 0 : index
    %c0_49 = arith.constant 0 : index
    %130 = vector.load %arg12[%c0_48, %c0_49] : memref<8x32xf32, #tpu.memory_space<vmem>>, vector<8x32xf32>
    tpu.vector_store %arg12[%c0_48, %c0_49], %129 {strides = array<i32>} : memref<8x32xf32, #tpu.memory_space<vmem>>, vector<8x32xf32>,
    return
  }
  func.func @transform_0(%arg0: i32) -> (i32, i32) {
    %c0_i32 = arith.constant 0 : i32
    %c0_i32_0 = arith.constant 0 : i32
    return %arg0, %c0_i32 : i32, i32
  }
  func.func @transform_1(%arg0: i32) -> (i32, i32) {
    %c0_i32 = arith.constant 0 : i32
    %c0_i32_0 = arith.constant 0 : i32
    return %arg0, %c0_i32 : i32, i32
  }
  func.func @transform_2(%arg0: i32) -> (i32, i32) {
    %c0_i32 = arith.constant 0 : i32
    %c0_i32_0 = arith.constant 0 : i32
    return %arg0, %c0_i32 : i32, i32
  }
  func.func @transform_3(%arg0: i32) -> (i32, i32) {
    %c0_i32 = arith.constant 0 : i32
    %c0_i32_0 = arith.constant 0 : i32
    %c0_i32_1 = arith.constant 0 : i32
    return %c0_i32, %c0_i32_0 : i32, i32
  }
  func.func @transform_4(%arg0: i32) -> (i32, i32) {
    %c0_i32 = arith.constant 0 : i32
    %c0_i32_0 = arith.constant 0 : i32
    %c0_i32_1 = arith.constant 0 : i32
    return %c0_i32, %c0_i32_0 : i32, i32
  }
  func.func @transform_5(%arg0: i32) -> (i32, i32) {
    %c0_i32 = arith.constant 0 : i32
    %c0_i32_0 = arith.constant 0 : i32
    %c0_i32_1 = arith.constant 0 : i32
    return %c0_i32, %c0_i32_0 : i32, i32
  }
  func.func @transform_6(%arg0: i32) -> (i32, i32) {
    %c0_i32 = arith.constant 0 : i32
    %c0_i32_0 = arith.constant 0 : i32
    %c0_i32_1 = arith.constant 0 : i32
    return %c0_i32, %c0_i32_0 : i32, i32
  }
  func.func @transform_7(%arg0: i32) -> (i32, i32) {
    %c0_i32 = arith.constant 0 : i32
    %c0_i32_0 = arith.constant 0 : i32
    %c0_i32_1 = arith.constant 0 : i32
    return %c0_i32, %c0_i32_0 : i32, i32
  }
  func.func @transform_8(%arg0: i32) -> (i32, i32) {
    %c0_i32 = arith.constant 0 : i32
    %c0_i32_0 = arith.constant 0 : i32
    %c0_i32_1 = arith.constant 0 : i32
    return %c0_i32, %c0_i32_0 : i32, i32
  }
  func.func @transform_9(%arg0: i32) -> (i32, i32) {
    %c0_i32 = arith.constant 0 : i32
    %c0_i32_0 = arith.constant 0 : i32
    %c0_i32_1 = arith.constant 0 : i32
    return %c0_i32, %c0_i32_0 : i32, i32
  }
  func.func @transform_10(%arg0: i32) -> (i32, i32) {
    %c0_i32 = arith.constant 0 : i32
    %c0_i32_0 = arith.constant 0 : i32
    %c0_i32_1 = arith.constant 0 : i32
    return %c0_i32, %c0_i32_0 : i32, i32
  }
  func.func @transform_11(%arg0: i32) -> (i32, i32) {
    %c0_i32 = arith.constant 0 : i32
    %c0_i32_0 = arith.constant 0 : i32
    return %arg0, %c0_i32 : i32, i32
  }
}

</mosaic_0001>

<bundles_post_ra>
// kernel: tpu_custom_call.1
= control target key start
LH: loop header
LB: loop body
LE: loop exit
PB: predicated region body
PF: predicated region fallthrough
CT: control target
= control target key end

     0   :  { %s2814_s0 = inlined_call_operand.hbm [shape: f32[16,32], index: 0, kind: input, shape index: {}]   ;;  %s2815_s1 = inlined_call_operand.hbm [shape: f32[16,32], index: 1, kind: input, shape index: {}]   ;;  %s2816_s2 = inlined_call_operand.hbm [shape: f32[16,32], index: 2, kind: input, shape index: {}]   ;;  %s2817_s3 = inlined_call_operand.hbm [shape: f32[32,32], index: 3, kind: input, shape index: {}]   ;;  %s2818_s4 = inlined_call_operand.hbm [shape: f32[1,32], index: 4, kind: input, shape index: {}]   ;;  %s2819_s5 = inlined_call_operand.hbm [shape: f32[32,32], index: 5, kind: input, shape index: {}]   ;;  %s2820_s6 = inlined_call_operand.hbm [shape: f32[1,32], index: 6, kind: input, shape index: {}]   ;;  %s2821_s7 = inlined_call_operand.hbm [shape: f32[32,32], index: 7, kind: input, shape index: {}]   ;;  %s2822_s8 = inlined_call_operand.hbm [shape: f32[1,32], index: 8, kind: input, shape index: {}]   ;;  %s2823_s9 = inlined_call_operand.hbm [shape: f32[32,32], index: 9, kind: input, shape index: {}]   ;;  %s2824_s10 = inlined_call_operand.hbm [shape: f32[1,32], index: 10, kind: input, shape index: {}]   ;;  %s2825_s11 = inlined_call_operand.hbm [shape: f32[16,32], index: 11, kind: output, shape index: {}]  }
   0x1   :  { %2846 = sst [smem:[#allocation34_spill]] %s2815_s1 }
   0x2   :  { %2847 = sst [smem:[#allocation35_spill]] %s2816_s2 }
   0x3   :  { %2848 = sst [smem:[#allocation36_spill]] %s2817_s3 }
   0x4   :  { %2849 = sst [smem:[#allocation37_spill]] %s2819_s5 }
   0x5   :  { %2850 = sst [smem:[#allocation38_spill]] %s2821_s7 }
   0x6   :  { %2851 = sst [smem:[#allocation39_spill]] %s2823_s9 }
   0x7   :  { %2852 = sst [smem:[#allocation40_spill]] %s2825_s11 }
   0x8   :  { %16 = vsyncpa [#allocation4], 0 }
   0x9   :  { %18 = vsyncpa [#allocation4 + $0x1], 0 }
   0xa   :  { %19 = vsyncpa [#allocation7], 0 }
   0xb   :  { %21 = vsyncpa [#allocation7 + $0x1], 0 }
   0xc   :  { %22 = vsyncpa [#allocation10], 0 }
   0xd   :  { %23 = vsyncpa [#allocation13], 0 }
   0xe   :  { %24 = vsyncpa [#allocation16], 0 }
   0xf   :  { %25 = vsyncpa [#allocation19], 0 }
  0x10   :  { %26 = vsyncpa [#allocation5], 0 }
  0x11   :  { %28 = vsyncpa [#allocation5 + $0x1], 0  ;;  %s2286_s17 = smov 0   ;;  %s2288_s18 = smov 0  }
  0x12   :  { %s2290_s19 = smov 0   ;;  %s2292_s20 = smov 0  }
  0x13 LB: > { %2853 = sst [smem:[#allocation29_spill]] %s2202_s20  ;;  %s2204_s21 = smov [#allocation9]   ;;  %s2202_s20 = sphi %s2292_s20, %s2896_s20   ;;  %s2198_s19 = sphi %s2290_s19, %s2900_s19   ;;  %s2194_s18 = sphi %s2288_s18, %s2899_s18   ;;  %s2190_s17 = sphi %s2286_s17, %s2898_s17  }
  0x14   : > { %s323_s22 = sshll.u32 %s2204_s21, 4  ;;  %s2307_s23 = sadd.s32 4294967295, %s2202_s20   ;;  %s2312_s22 = int_to_ptr.vmem [resolvable:$true] %s323_s22 }
  0x15   : > { %p1482_p0 = scmp.ge.s32.totalorder %s2202_s20, 1  ;;  %p2829_p1 = scmp.eq.s32.totalorder %s2307_s23, 0 }
  0x16   : > { %p311_p2 = scmp.lt.s32.totalorder %s2202_s20, 3  ;;  %s2205_s25 = smov [#allocation12]  }
  0x17   : > { %s347_s26 = sshll.u32 %s2205_s25, 4  ;;  %s2206_s28 = smov [#allocation15]   ;;  %s2327_s26 = int_to_ptr.vmem [resolvable:$true] %s347_s26 }
  0x18   : > { %p2314_p3 = pnand %p1482_p0, %p311_p2  ;;  %s371_s29 = sshll.u32 %s2206_s28, 4  ;;  %s2329_s29 = int_to_ptr.vmem [resolvable:$true] %s371_s29 }
  0x19   : > { %s2857_s3 = sld [smem:[#allocation36_spill]] }
  0x1a   : > { %s2854_s24 = scalar_select %p2314_p3, 1, 0 }
  0x1b   : > { %p1679_p5 = pneg %p2314_p3 }
  0x1c   : > { %2855 = sst [smem:[#allocation30_spill]] %s2854_s24 }
  0x1d   : > { %p2323_p6 = pnand %p1679_p5, %p2829_p1 }
  0x1f   : > { %s2856_s27 = scalar_select %p2323_p6, 1, 0 }
  0x20   : > { %s1802_s13 = scalar_lea.hbm %s2857_s3, 512  ;;  %p2339_p8 = pneg %p2323_p6 }
  0x21   : > { %p1803_p7 = scmp.ne.s32.totalorder %s2857_s3, %s1802_s13  ;;  %p1809_p11 = scmp.lt.u32.totalorder %s1802_s13, %s2857_s3 }
  0x22   : > { %s2858_s16 = scalar_select %p2339_p8, 1, 0 }
  0x23   : > { %p1805_p9 = pnand %p2339_p8, %p1803_p7 }
  0x25   : > { %p1806_p10 = pneg %p1805_p9 }
  0x27   : > { %p1811_p12 = pnand %p1809_p11, %p1806_p10 }
  0x29   : > { %1814 = shalt.err (!%p1811_p12)
}
  0x2a   : > { %s1815_s28 = scalar_lea.vmem %s2312_s22, 512  ;;  %p1823_p5 = scmp.lt.s32.totalorder %s2312_s22, %s2312_s22 }
  0x2b   : > { %p1816_p13 = scmp.ne.s32.totalorder %s2312_s22, %s1815_s28  ;;  %p1824_p4 = scmp.lt.s32.totalorder %s1815_s28, %s1815_s28 }
  0x2d   : > { %p1818_p0 = pnand %p1816_p13, %p2339_p8  ;;  %p1825_p7 = por %p1824_p4, %p1823_p5 }
  0x2f   : > { %p1819_p2 = pneg %p1818_p0 }
  0x31   : > { %p1826_p9 = pnand %p1825_p7, %p1819_p2 }
  0x33   : > { %1829 = shalt.err (!%p1826_p9)
}
  0x34   : > { %s2207_s30 = smov 128   ;;  %s2208_s12 = smov 8  }
  0x35   : > { %1682 = dma.hbm_to_vmem [thread:$0]  (!%p2323_p6), %s2857_s3, 512, %s2312_s22, [#allocation10], %s2207_s30, %s2207_s30, %s2208_s12  }
  0x36   : > { %s2859_s5 = sld [smem:[#allocation37_spill]] }
  0x3c   : > { %s1830_s25 = scalar_lea.hbm %s2859_s5, 512 }
  0x3d   : > { %p1831_p4 = scmp.ne.s32.totalorder %s2859_s5, %s1830_s25  ;;  %p1837_p12 = scmp.lt.u32.totalorder %s1830_s25, %s2859_s5 }
  0x3f   : > { %p1833_p10 = pnand %p1831_p4, %p2339_p8 }
  0x41   : > { %p1834_p11 = pneg %p1833_p10 }
  0x43   : > { %p1839_p13 = pnand %p1837_p12, %p1834_p11 }
  0x45   : > { %1842 = shalt.err (!%p1839_p13)
}
  0x46   : > { %s1843_s22 = scalar_lea.vmem %s2327_s26, 512  ;;  %p1851_p7 = scmp.lt.s32.totalorder %s2327_s26, %s2327_s26 }
  0x47   : > { %p1844_p0 = scmp.ne.s32.totalorder %s2327_s26, %s1843_s22  ;;  %p1852_p9 = scmp.lt.s32.totalorder %s1843_s22, %s1843_s22 }
  0x49   : > { %p1846_p2 = pnand %p1844_p0, %p2339_p8  ;;  %p1853_p4 = por %p1852_p9, %p1851_p7 }
  0x4b   : > { %p1847_p5 = pneg %p1846_p2 }
  0x4d   : > { %p1854_p10 = pnand %p1853_p4, %p1847_p5 }
  0x4f   : > { %1857 = shalt.err (!%p1854_p10)
}
  0x50   : > { %1688 = dma.hbm_to_vmem [thread:$0]  (!%p2323_p6), %s2859_s5, 512, %s2327_s26, [#allocation13], %s2207_s30, %s2207_s30, %s2208_s12  }
  0x51   : > { %s2860_s7 = sld [smem:[#allocation38_spill]] }
  0x57   : > { %s1858_s14 = scalar_lea.hbm %s2860_s7, 512 }
  0x58   : > { %p1859_p11 = scmp.ne.s32.totalorder %s2860_s7, %s1858_s14  ;;  %p1865_p0 = scmp.lt.u32.totalorder %s1858_s14, %s2860_s7 }
  0x5a   : > { %p1861_p12 = pnand %p1859_p11, %p2339_p8 }
  0x5c   : > { %p1862_p13 = pneg %p1861_p12 }
  0x5e   : > { %p1867_p2 = pnand %p1865_p0, %p1862_p13 }
  0x60   : > { %1870 = shalt.err (!%p1867_p2)
}
  0x61   : > { %s1871_s26 = scalar_lea.vmem %s2329_s29, 512  ;;  %p1879_p4 = scmp.lt.s32.totalorder %s2329_s29, %s2329_s29 }
  0x62   : > { %p1872_p5 = scmp.ne.s32.totalorder %s2329_s29, %s1871_s26  ;;  %p1880_p10 = scmp.lt.s32.totalorder %s1871_s26, %s1871_s26 }
  0x64   : > { %p1874_p7 = pnand %p1872_p5, %p2339_p8  ;;  %p1881_p11 = por %p1880_p10, %p1879_p4 }
  0x66   : > { %p1875_p9 = pneg %p1874_p7 }
  0x68   : > { %p1882_p12 = pnand %p1881_p11, %p1875_p9 }
  0x6a   : > { %1885 = shalt.err (!%p1882_p12)
}
  0x6b   : > { %1694 = dma.hbm_to_vmem [thread:$0]  (!%p2323_p6), %s2860_s7, 512, %s2329_s29, [#allocation16], %s2207_s30, %s2207_s30, %s2208_s12  }
  0x6c   : > { %s2209_s11 = smov [#allocation18]   ;;  %s2861_s9 = sld [smem:[#allocation39_spill]] }
  0x6d   : > { %s395_s24 = sshll.u32 %s2209_s11, 4  ;;  %s396_s24 = int_to_ptr.vmem [resolvable:$true] %s395_s24 }
  0x72   : > { %s1886_s15 = scalar_lea.hbm %s2861_s9, 512 }
  0x73   : > { %p1887_p13 = scmp.ne.s32.totalorder %s2861_s9, %s1886_s15  ;;  %p1893_p5 = scmp.lt.u32.totalorder %s1886_s15, %s2861_s9 }
  0x75   : > { %p1889_p0 = pnand %p1887_p13, %p2339_p8 }
  0x77   : > { %p1890_p2 = pneg %p1889_p0 }
  0x79   : > { %p1895_p7 = pnand %p1893_p5, %p1890_p2 }
  0x7b   : > { %1898 = shalt.err (!%p1895_p7)
}
  0x7c   : > { %s1899_s29 = scalar_lea.vmem %s396_s24, 512  ;;  %p1907_p11 = scmp.lt.s32.totalorder %s396_s24, %s396_s24 }
  0x7d   : > { %p1900_p9 = scmp.ne.s32.totalorder %s396_s24, %s1899_s29  ;;  %p1908_p12 = scmp.lt.s32.totalorder %s1899_s29, %s1899_s29 }
  0x7f   : > { %p1902_p4 = pnand %p1900_p9, %p2339_p8  ;;  %p1909_p1 = por %p1908_p12, %p1907_p11 }
  0x81   : > { %p1903_p10 = pneg %p1902_p4 }
  0x83   : > { %p1910_p3 = pnand %p1909_p1, %p1903_p10 }
  0x85   : > { %1913 = shalt.err (!%p1910_p3)
}
  0x86   : > { %1700 = dma.hbm_to_vmem [thread:$0]  (!%p2323_p6), %s2861_s9, 512, %s396_s24, [#allocation19], %s2207_s30, %s2207_s30, %s2208_s12  }
  0x87   : > { %s1481_s11 = sadd.s32 4294967294, %s2202_s20   ;;  %s2438_s13 = sadd.s32 1, %s2202_s20  }
  0x88   : > { %2862 = sst [smem:[#allocation31_spill]] %s2438_s13  ;;  %s38_s14 = ssub.s32 %s2202_s20, %s2438_s13 }
  0x89   : > { %s41_s15 = sadd.s32 1, %s2198_s19  ;;  %p39_p1 = scmp.eq.s32.totalorder %s38_s14, 0 }
  0x8a   : > { %p48_p3 = scmp.ne.s32.totalorder %s2198_s19, %s2194_s18  ;;  %p49_p13 = scmp.eq.s32.totalorder %s2202_s20, 0 }
  0x8b   : > { %p54_p0 = scmp.ne.s32.totalorder %s2194_s18, %s2190_s17  ;;  %p2864_p5 = scmp.eq.s32.totalorder %s2307_s23, 0 }
  0x8c   : > { %s2449_s21 = scalar_select %p39_p1, %s2198_s19, %s41_s15  }
  0x8d   : > { %p50_p2 = por %p49_p13, %p48_p3  ;;  %p2453_p7 = por %p2864_p5, %p54_p0 }
  0x8e   : > { %2863 = sst [smem:[#allocation32_spill]] %s2449_s21  ;;  %p298_p9 = scmp.eq.s32.totalorder %s2307_s23, 1 }
  0x8f   : > { %s2865_s25 = scalar_select %p2453_p7, 1, 0 }
  0x90   : > { %p304_p4 = scmp.eq.s32.totalorder %s1481_s11, 1  ;;  %p1726_p10 = scmp.lt.s32.totalorder %s2202_s20, 2 }
  0x91   : > { %s2831_s30 = sand.u32 1, %s2198_s19   ;;  %p2460_p11 = por %p298_p9, %p48_p3 }
  0x92   : > { %p2464_p12 = por %p304_p4, %p54_p0  ;;  %s2470_s28 = sshll.u32 %s2831_s30, 3 }
  0x93   : > { %s2866_s12 = scalar_select %p2460_p11, 1, 0 }
  0x94   : > { %s2867_s24 = scalar_select %p2464_p12, 1, 0 }
  0x95   : > { %s2473_s26 = sshll.u32 %s2202_s20, 7  ;;  %p2475_p1 = pnand %p1726_p10, %p50_p2 }
  0x96   : > { %2868 = sst [smem:[#allocation33_spill]] %s2867_s24  ;;  %s438_s22 = sand.u32 1, %s2202_s20  }
  0x97   : > { %s2869_s29 = scalar_select %p2475_p1, 1, 0 }
  0x98   : > { %s2870_s1 = sld [smem:[#allocation34_spill]]  ;;  %s442_s15 = scalar_lea.vmem [#allocation6], %s2470_s28 }
  0x99   : > { %s449_s30 = sshll.u32 %s442_s15, 4  ;;  %s2210_s3 = smov [#allocation11]   ;;  %s2487_s30 = int_to_ptr.vmem [resolvable:$true] %s449_s30 }
  0x9a   : > { %s2489_s5 = sshll.u32 %s2210_s3, 4  ;;  %s2491_s7 = scalar_lea.sflag [#allocation7], %s438_s22  ;;  %s338_s5 = int_to_ptr.vmem [resolvable:$true] %s2489_s5 }
  0x9b   : > { %p2497_p13 = pneg %p2475_p1 }
  0x9d   : > { %s2871_s2 = scalar_select %p2497_p13, 1, 0 }
  0x9e   : > { %s2484_s14 = scalar_lea.hbm %s2870_s1, %s2473_s26  ;;  %s1919_s21 = scalar_lea.hbm %s2870_s1, 256 }
  0x9f   : > { %s1914_s9 = scalar_lea.hbm %s2484_s14, 128  ;;  %p1920_p5 = scmp.lt.u32.totalorder %s2484_s14, %s2870_s1 }
  0xa0   : > { %p1915_p3 = scmp.ne.s32.totalorder %s2484_s14, %s1914_s9  ;;  %p1921_p9 = scmp.lt.u32.totalorder %s1919_s21, %s1914_s9 }
  0xa1   : > { %p1923_p10 = scmp.lt.u32.totalorder %s1914_s9, %s2484_s14 }
  0xa2   : > { %p1917_p0 = pnand %p2497_p13, %p1915_p3  ;;  %p1922_p4 = por %p1921_p9, %p1920_p5 }
  0xa4   : > { %p1918_p2 = pneg %p1917_p0  ;;  %p1924_p12 = por %p1923_p10, %p1922_p4 }
  0xa6   : > { %p1925_p11 = pnand %p1924_p12, %p1918_p2 }
  0xa8   : > { %1928 = shalt.err (!%p1925_p11)
}
  0xa9   : > { %s1929_s22 = scalar_lea.vmem %s2487_s30, 128  ;;  %s2211_s11 = smov [#allocation6]  }
  0xaa   : > { %p1930_p3 = scmp.ne.s32.totalorder %s2487_s30, %s1929_s22  ;;  %s1934_s15 = sshll.u32 %s2211_s11, 4  ;;  %s1935_s15 = int_to_ptr.vmem [resolvable:$false] %s1934_s15 }
  0xab   : > { %s1936_s13 = scalar_lea.vmem %s1935_s15, 256  ;;  %p1937_p6 = scmp.lt.s32.totalorder %s2487_s30, %s1935_s15 }
  0xac   : > { %p1932_p0 = pnand %p1930_p3, %p2497_p13  ;;  %p1938_p8 = scmp.lt.s32.totalorder %s1936_s13, %s1929_s22 }
  0xae   : > { %p1933_p7 = pneg %p1932_p0  ;;  %p1939_p5 = por %p1938_p8, %p1937_p6 }
  0xb0   : > { %p1940_p9 = pnand %p1939_p5, %p1933_p7 }
  0xb2   : > { %1943 = shalt.err (!%p1940_p9)
}
  0xb3   : > { %1710 = dma.hbm_to_vmem [thread:$0]  (!%p2475_p1), %s2484_s14, 128, %s2487_s30, %s2491_s7  }
  0xb4   : > { %s1944_s3 = scalar_lea.hbm %s2818_s4, 16  ;;  %p2872_p6 = scmp.ne.s32.totalorder %s2858_s16, 0 }
  0xb5   : > { %p1945_p11 = scmp.ne.s32.totalorder %s2818_s4, %s1944_s3  ;;  %p1951_p12 = scmp.lt.u32.totalorder %s1944_s3, %s2818_s4 }
  0xb7   : > { %p1947_p8 = pnand %p1945_p11, %p2872_p6 }
  0xb9   : > { %p1948_p7 = pneg %p1947_p8 }
  0xbb   : > { %p1953_p2 = pnand %p1951_p12, %p1948_p7 }
  0xbd   : > { %1956 = shalt.err (!%p1953_p2)
}
  0xbe   : > { %s1957_s13 = scalar_lea.vmem %s338_s5, 16  ;;  %s1964_s30 = scalar_lea.vmem %s338_s5, 32 }
  0xbf   : > { %p1958_p4 = scmp.ne.s32.totalorder %s338_s5, %s1957_s13  ;;  %p1965_p0 = scmp.lt.s32.totalorder %s338_s5, %s338_s5 }
  0xc0   : > { %p1966_p5 = scmp.lt.s32.totalorder %s1964_s30, %s1957_s13 }
  0xc1   : > { %p1960_p10 = pnand %p1958_p4, %p2872_p6 }
  0xc2   : > { %p1967_p9 = por %p1966_p5, %p1965_p0 }
  0xc3   : > { %p1961_p3 = pneg %p1960_p10 }
  0xc5   : > { %p1968_p1 = pnand %p1967_p9, %p1961_p3 }
  0xc7   : > { %1971 = shalt.err (!%p1968_p1)
}
  0xc8   : > { %p2873_p11 = scmp.ne.s32.totalorder %s2856_s27, 0  ;;  %s2212_s9 = smov [#allocation14]  }
  0xc9   : > { %s361_s21 = sshll.u32 %s2212_s9, 4  ;;  %s2213_s3 = smov [#allocation17]   ;;  %s362_s21 = int_to_ptr.vmem [resolvable:$true] %s361_s21 }
  0xca   : > { %1685 = dma.hbm_to_vmem [thread:$0]  (!%p2873_p11), %s2818_s4, 16, %s338_s5, [#allocation10]  }
  0xcb   : > { %s385_s11 = sshll.u32 %s2213_s3, 4  ;;  %s1972_s20 = scalar_lea.hbm %s2820_s6, 16  ;;  %s386_s11 = int_to_ptr.vmem [resolvable:$true] %s385_s11 }
  0xcc   : > { %p1973_p1 = scmp.ne.s32.totalorder %s2820_s6, %s1972_s20  ;;  %p1979_p12 = scmp.lt.u32.totalorder %s1972_s20, %s2820_s6 }
  0xce   : > { %p1975_p8 = pnand %p1973_p1, %p2872_p6 }
  0xd0   : > { %p1976_p7 = pneg %p1975_p8 }
  0xd2   : > { %p1981_p2 = pnand %p1979_p12, %p1976_p7 }
  0xd4   : > { %1984 = shalt.err (!%p1981_p2)
}
  0xd5   : > { %s1985_s5 = scalar_lea.vmem %s362_s21, 16  ;;  %s1992_s14 = scalar_lea.vmem %s362_s21, 32 }
  0xd6   : > { %p1986_p4 = scmp.ne.s32.totalorder %s362_s21, %s1985_s5  ;;  %p1993_p0 = scmp.lt.s32.totalorder %s362_s21, %s362_s21 }
  0xd7   : > { %p1994_p5 = scmp.lt.s32.totalorder %s1992_s14, %s1985_s5 }
  0xd8   : > { %p1988_p10 = pnand %p1986_p4, %p2872_p6 }
  0xd9   : > { %p1995_p9 = por %p1994_p5, %p1993_p0 }
  0xda   : > { %p1989_p3 = pneg %p1988_p10 }
  0xdc   : > { %p1996_p13 = pnand %p1995_p9, %p1989_p3 }
  0xde   : > { %1999 = shalt.err (!%p1996_p13)
}
  0xdf   : > { %1691 = dma.hbm_to_vmem [thread:$0]  (!%p2873_p11), %s2820_s6, 16, %s362_s21, [#allocation13]  }
  0xe0   : > { %s2000_s22 = scalar_lea.hbm %s2822_s8, 16 }
  0xe1   : > { %p2001_p1 = scmp.ne.s32.totalorder %s2822_s8, %s2000_s22  ;;  %p2007_p13 = scmp.lt.u32.totalorder %s2000_s22, %s2822_s8 }
  0xe3   : > { %p2003_p8 = pnand %p2001_p1, %p2872_p6 }
  0xe5   : > { %p2004_p7 = pneg %p2003_p8 }
  0xe7   : > { %p2009_p12 = pnand %p2007_p13, %p2004_p7 }
  0xe9   : > { %2012 = shalt.err (!%p2009_p12)
}
  0xea   : > { %s2013_s5 = scalar_lea.vmem %s386_s11, 16  ;;  %s2020_s21 = scalar_lea.vmem %s386_s11, 32 }
  0xeb   : > { %p2014_p2 = scmp.ne.s32.totalorder %s386_s11, %s2013_s5  ;;  %p2021_p3 = scmp.lt.s32.totalorder %s386_s11, %s386_s11 }
  0xec   : > { %p2022_p0 = scmp.lt.s32.totalorder %s2020_s21, %s2013_s5 }
  0xed   : > { %p2016_p4 = pnand %p2014_p2, %p2872_p6 }
  0xee   : > { %p2023_p5 = por %p2022_p0, %p2021_p3 }
  0xef   : > { %p2017_p10 = pneg %p2016_p4 }
  0xf1   : > { %p2024_p9 = pnand %p2023_p5, %p2017_p10 }
  0xf3   : > { %2027 = shalt.err (!%p2024_p9)
}
  0xf4   : > { %1697 = dma.hbm_to_vmem [thread:$0]  (!%p2873_p11), %s2822_s8, 16, %s386_s11, [#allocation16]  }
  0xf5   : > { %s2214_s3 = smov [#allocation20]   ;;  %s2028_s15 = scalar_lea.hbm %s2824_s10, 16 }
  0xf6   : > { %s409_s20 = sshll.u32 %s2214_s3, 4  ;;  %p2029_p1 = scmp.ne.s32.totalorder %s2824_s10, %s2028_s15  ;;  %s410_s20 = int_to_ptr.vmem [resolvable:$true] %s409_s20 }
  0xf7   : > { %p2035_p13 = scmp.lt.u32.totalorder %s2028_s15, %s2824_s10 }
  0xf8   : > { %p2031_p8 = pnand %p2029_p1, %p2872_p6 }
  0xfa   : > { %p2032_p7 = pneg %p2031_p8 }
  0xfc   : > { %p2037_p12 = pnand %p2035_p13, %p2032_p7 }
  0xfe   : > { %2040 = shalt.err (!%p2037_p12)
}
  0xff   : > { %s2041_s11 = scalar_lea.vmem %s410_s20, 16  ;;  %s2048_s21 = scalar_lea.vmem %s410_s20, 32 }
 0x100   : > { %p2042_p2 = scmp.ne.s32.totalorder %s410_s20, %s2041_s11  ;;  %p2049_p3 = scmp.lt.s32.totalorder %s410_s20, %s410_s20 }
 0x101   : > { %p2050_p0 = scmp.lt.s32.totalorder %s2048_s21, %s2041_s11 }
 0x102   : > { %p2044_p4 = pnand %p2042_p2, %p2872_p6 }
 0x103   : > { %p2051_p5 = por %p2050_p0, %p2049_p3 }
 0x104   : > { %p2045_p10 = pneg %p2044_p4 }
 0x106   : > { %p2052_p9 = pnand %p2051_p5, %p2045_p10 }
 0x108   : > { %2055 = shalt.err (!%p2052_p9)
}
 0x109   : > { %1703 = dma.hbm_to_vmem [thread:$0]  (!%p2873_p11), %s2824_s10, 16, %s410_s20, [#allocation19]  }
 0x10a   : > { %s2598_s24 = scalar_lea.hbm %s2814_s0, %s2473_s26  ;;  %s424_s22 = scalar_lea.vmem [#allocation3], %s2470_s28 }
 0x10b   : > { %s431_s15 = sshll.u32 %s424_s22, 4  ;;  %s2874_s27 = sand.u32 1, %s2198_s19   ;;  %s432_s15 = int_to_ptr.vmem [resolvable:$true] %s431_s15 }
 0x10c   : > { %s421_s13 = scalar_lea.sflag [#allocation4], %s2874_s27  ;;  %s2056_s30 = scalar_lea.hbm %s2598_s24, 128 }
 0x10d   : > { %p2057_p6 = scmp.ne.s32.totalorder %s2598_s24, %s2056_s30  ;;  %p2875_p1 = scmp.ne.s32.totalorder %s2871_s2, 0 }
 0x10e   : > { %s2061_s5 = scalar_lea.hbm %s2814_s0, 256  ;;  %p2062_p11 = scmp.lt.u32.totalorder %s2598_s24, %s2814_s0 }
 0x10f   : > { %p2059_p8 = pnand %p2057_p6, %p2875_p1  ;;  %p2063_p13 = scmp.lt.u32.totalorder %s2061_s5, %s2056_s30 }
 0x110   : > { %p2065_p2 = scmp.lt.u32.totalorder %s2056_s30, %s2598_s24 }
 0x111   : > { %p2060_p7 = pneg %p2059_p8  ;;  %p2064_p12 = por %p2063_p13, %p2062_p11 }
 0x113   : > { %p2066_p4 = por %p2065_p2, %p2064_p12 }
 0x115   : > { %p2067_p10 = pnand %p2066_p4, %p2060_p7 }
 0x117   : > { %2070 = shalt.err (!%p2067_p10)
}
 0x118   : > { %s2071_s14 = scalar_lea.vmem %s432_s15, 128  ;;  %s2215_s9 = smov [#allocation3]  }
 0x119   : > { %p2072_p3 = scmp.ne.s32.totalorder %s432_s15, %s2071_s14  ;;  %s2076_s3 = sshll.u32 %s2215_s9, 4  ;;  %s2077_s3 = int_to_ptr.vmem [resolvable:$false] %s2076_s3 }
 0x11a   : > { %s2078_s16 = scalar_lea.vmem %s2077_s3, 256  ;;  %p2079_p9 = scmp.lt.s32.totalorder %s432_s15, %s2077_s3 }
 0x11b   : > { %p2074_p0 = pnand %p2072_p3, %p2875_p1  ;;  %p2080_p6 = scmp.lt.s32.totalorder %s2078_s16, %s2071_s14 }
 0x11d   : > { %p2075_p5 = pneg %p2074_p0  ;;  %p2081_p8 = por %p2080_p6, %p2079_p9 }
 0x11f   : > { %p2082_p11 = pnand %p2081_p8, %p2075_p5 }
 0x121   : > { %2085 = shalt.err (!%p2082_p11)
}
 0x122   : > { %p2876_p13 = scmp.ne.s32.totalorder %s2869_s29, 0  ;;  %s2877_s30 = sld [smem:[#allocation35_spill]] }
 0x123   : > { %s460_s1 = scalar_lea.vmem [#allocation8], %s2470_s28 }
 0x124   : > { %1707 = dma.hbm_to_vmem [thread:$0]  (!%p2876_p13), %s2598_s24, 128, %s432_s15, %s421_s13  }
 0x125   : > { %s467_s5 = sshll.u32 %s460_s1, 4  ;;  %s468_s5 = int_to_ptr.vmem [resolvable:$true] %s467_s5 }
 0x128   : > { %s2624_s20 = scalar_lea.hbm %s2877_s30, %s2473_s26  ;;  %s2091_s24 = scalar_lea.hbm %s2877_s30, 256 }
 0x129   : > { %s2086_s11 = scalar_lea.hbm %s2624_s20, 128  ;;  %p2092_p4 = scmp.lt.u32.totalorder %s2624_s20, %s2877_s30 }
 0x12a   : > { %p2087_p7 = scmp.ne.s32.totalorder %s2624_s20, %s2086_s11  ;;  %p2093_p10 = scmp.lt.u32.totalorder %s2091_s24, %s2086_s11 }
 0x12b   : > { %p2095_p0 = scmp.lt.u32.totalorder %s2086_s11, %s2624_s20 }
 0x12c   : > { %p2089_p12 = pnand %p2087_p7, %p2875_p1  ;;  %p2094_p3 = por %p2093_p10, %p2092_p4 }
 0x12e   : > { %p2090_p2 = pneg %p2089_p12  ;;  %p2096_p5 = por %p2095_p0, %p2094_p3 }
 0x130   : > { %p2097_p9 = pnand %p2096_p5, %p2090_p2 }
 0x132   : > { %2100 = shalt.err (!%p2097_p9)
}
 0x133   : > { %s2101_s28 = scalar_lea.vmem %s468_s5, 128  ;;  %s2216_s26 = smov [#allocation8]  }
 0x134   : > { %p2102_p6 = scmp.ne.s32.totalorder %s468_s5, %s2101_s28  ;;  %s2106_s9 = sshll.u32 %s2216_s26, 4  ;;  %s2107_s9 = int_to_ptr.vmem [resolvable:$false] %s2106_s9 }
 0x135   : > { %s2108_s3 = scalar_lea.vmem %s2107_s9, 256  ;;  %p2109_p7 = scmp.lt.s32.totalorder %s468_s5, %s2107_s9 }
 0x136   : > { %p2104_p8 = pnand %p2102_p6, %p2875_p1  ;;  %p2110_p12 = scmp.lt.s32.totalorder %s2108_s3, %s2101_s28 }
 0x138   : > { %p2105_p11 = pneg %p2104_p8  ;;  %p2111_p13 = por %p2110_p12, %p2109_p7 }
 0x13a   : > { %p2112_p4 = pnand %p2111_p13, %p2105_p11 }
 0x13c   : > { %2115 = shalt.err (!%p2112_p4)
}
 0x13d   : > { %p2878_p10 = scmp.ne.s32.totalorder %s2869_s29, 0  ;;  %s2879_s16 = sld [smem:[#allocation30_spill]] }
 0x13f   : > { %1713 = dma.hbm_to_vmem [thread:$0]  (!%p2878_p10), %s2624_s20, 128, %s468_s5, %s2491_s7  }
 0x143   : > { %p2880_p2 = scmp.ne.s32.totalorder %s2879_s16, 0 }
 0x144   : > { %s2648_s2 = sand.u32 (!%p2880_p2), 1, %s2194_s18   ;;  %p2881_p1 = scmp.ne.s32.totalorder (!%p2880_p2), %s2865_s25, 0 }
 0x145   : > { %476 = sbr.rel (%p2880_p2) target bundleno = 1808 (0x710), region = 64  ;;  %s2651_s22 = sshll.u32 (!%p2880_p2), %s2648_s2, 3 }
 0x146   : > { %s479_s27 = scalar_lea.sflag (!%p2880_p2), [#allocation4], %s2648_s2  ;;  %s482_s1 = scalar_lea.vmem (!%p2880_p2), [#allocation3], %s2651_s22 }
 0x14c   : > { %2161 = dma.done.wait (%p2881_p1), %s479_s27, 128  }
 0x14d   : > { %2163 = vsyncadd (%p2881_p1), %s479_s27, 4294967168  ;;  %s487_s7 = sand.u32 1, %s2307_s23   ;;  %s491_s20 = scalar_lea.vmem [#allocation6], %s2651_s22 }
 0x14e   : > { %s488_s29 = scalar_lea.sflag [#allocation7], %s487_s7 }
 0x14f   : > { %2165 = dma.done.wait (%p2881_p1), %s488_s29, 256  }
 0x150   : > { %2167 = vsyncadd (%p2881_p1), %s488_s29, 4294967040  ;;  %s500_s5 = scalar_lea.vmem [#allocation8], %s2651_s22  ;;  %p2882_p13 = scmp.eq.s32.totalorder %s2307_s23, 0 }
 0x152   : > { %2169 = dma.done.wait (%p2882_p13), [#allocation10], 528   ;;  %p2883_p3 = pmov %p2882_p13 }
 0x154   : > { %2171 = vsyncadd (%p2883_p3), [#allocation10], 4294966768  ;;  %p2884_p0 = pmov %p2883_p3 }
 0x156   : > { %2173 = dma.done.wait (%p2884_p0), [#allocation13], 528   ;;  %p2885_p5 = pmov %p2884_p0 }
 0x157   : > { %p2886_p9 = pmov %p2884_p0 }
 0x158   : > { %2175 = vsyncadd (%p2885_p5), [#allocation13], 4294966768 }
 0x159   : > { %2177 = dma.done.wait (%p2886_p9), [#allocation16], 528   ;;  %p2887_p6 = pmov %p2884_p0 }
 0x15a   : > { %p2888_p8 = pmov %p2884_p0 }
 0x15b   : > { %2179 = vsyncadd (%p2887_p6), [#allocation16], 4294966768 }
 0x15c   : > { %2181 = dma.done.wait (%p2888_p8), [#allocation19], 528   ;;  %p2889_p11 = pmov %p2884_p0 }
 0x15d   : > { %v2217_v0 = vmov 0.0   ;;  %vm2218_vm0 = vmmov 0   ;;  %v594_v1 = vld [vmem:[#allocation12] sm:$0xff]  ;;  %v595_v2 = vld [vmem:[#allocation12 + $0x8] sm:$0xff]  ;;  %v596_v6 = vld [vmem:[#allocation12 + $0x10] sm:$0xff]  ;;  %vm613_vm1 = vcmask 261120  }
 0x15e   : > { %2183 = vsyncadd (%p2889_p11), [#allocation19], 4294966768  ;;  %1567 = vmatprep.subr.bf16.mxu1 %v2217_v0  ;;  %1559 = vmatprep.subr.bf16.mxu0 %v2217_v0  ;;  %v588_v3 = vld [vmem:[#allocation9] sm:$0xff]  ;;  %v598_v4 = vpack.c.bf16 %v595_v2, %v594_v1  ;;  %v589_v5 = vld [vmem:[#allocation9 + $0x8] sm:$0xff]  ;;  %vm761_vm2 = vcmask 64512   ;;  %s2219_s25 = smov 112  }
 0x15f   : > { %1571 = vmatprep.mubr.msk.bf16.mxu1 %vm2218_vm0, %v2217_v0  ;;  %1563 = vmatprep.mubr.msk.bf16.mxu0 %vm2218_vm0, %v2217_v0  ;;  %v597_v7 = vld [vmem:[#allocation12 + $0x18] sm:$0xff]  ;;  %v592_v8 = vpack.c.bf16 %v589_v5, %v588_v3  ;;  %v590_v9 = vld [vmem:[#allocation9 + $0x10] sm:$0xff]  ;;  %v1513_v17 = vld [vmem:[#allocation14] ss:$0 sm:$0xff]  ;;  %s2220_s11 = smov 120   ;;  %s2221_s21 = smov 104  }
 0x160   : > { %v591_v10 = vld [vmem:[#allocation9 + $0x18] sm:$0xff]  ;;  %1568 = vmatpush3.bf16.msra.mxu1 %v598_v4  ;;  %v599_v11 = vpack.c.bf16 %v597_v7, %v596_v6  ;;  %v584_v12 = vld [vmem:[%s491_s20] sm:$0xff]  ;;  %vm823_vm3 = vcmask 1043456   ;;  %s2222_s14 = smov 8   ;;  %s2223_s24 = smov 16   ;;  %vm985_vm4 = vcmask 130112  }
 0x161   : > { %1560 = vmatpush3.bf16.msra.mxu0 %v592_v8  ;;  %1569 = vmatprep.subr.bf16.mxu1 %v2217_v0  ;;  %v593_v13 = vpack.c.bf16 %v591_v10, %v590_v9  ;;  %v582_v14 = vld [vmem:[%s482_s1] sm:$0xff]  ;;  %v585_v15 = vpack.c.bf16 %v584_v12, %v584_v12  ;;  %v1511_v18 = vld [vmem:[#allocation11] ss:$0 sm:$0xff]  ;;  %v600_v33 = vld [vmem:[#allocation15] sm:$0xff]  ;;  %s2224_s15 = smov 24   ;;  %vm1101_vm5 = vcmask 195712  }
 0x162   : > { %1561 = vmatprep.subr.bf16.mxu0 %v2217_v0  ;;  %v583_v16 = vpack.c.bf16 %v582_v14, %v582_v14  ;;  %v601_v34 = vld [vmem:[#allocation15 + $0x8] sm:$0xff]  ;;  %v602_v35 = vld [vmem:[#allocation15 + $0x10] sm:$0xff]  ;;  %v603_v37 = vld [vmem:[#allocation15 + $0x18] sm:$0xff]  ;;  %vm1217_vm6 = vcmask 261312   ;;  %s1528_s13 = sshll.u32 %s2307_s23, 7  ;;  %s580_s28 = scalar_lea.vmem [#allocation21], %s2651_s22 }
 0x163   : > { %v604_v36 = vpack.c.bf16 %v601_v34, %v600_v33  ;;  %v605_v38 = vpack.c.bf16 %v603_v37, %v602_v35  ;;  %v586_v39 = vld [vmem:[%s500_s5] sm:$0xff]  ;;  %v1515_v55 = vld [vmem:[#allocation17] ss:$0 sm:$0xff]  ;;  %s1292_s26 = sshll.u32 %s580_s28, 4  ;;  %s2890_s16 = sld [smem:[#allocation40_spill]]  ;;  %s2771_s26 = int_to_ptr.vmem [resolvable:$true] %s1292_s26 }
 0x164   : > { %1570 = vmatpush3.bf16.msra.mxu1 %v599_v11  ;;  %v587_v40 = vpack.c.bf16 %v586_v39, %v586_v39  ;;  %s1279_s23 = scalar_lea.sflag [#allocation5], %s2648_s2  ;;  %s2116_s22 = scalar_lea.vmem %s2771_s26, 128 }
 0x165   : > { %1562 = vmatpush3.bf16.msra.mxu0 %v593_v13  ;;  %1583 = vmatprep.subr.bf16.mxu1 %v2217_v0  ;;  %p2117_p7 = scmp.ne.s32.totalorder %s2771_s26, %s2116_s22  ;;  %p2891_p12 = scmp.ne.s32.totalorder %s2866_s12, 0 }
 0x166   : > { %1575 = vmatprep.subr.bf16.mxu0 %v2217_v0  ;;  %s2225_s1 = smov [#allocation21]  }
 0x167   : > { %1572 = vmatmul.mubr.msk.bf16.vlgmr.msra.gmra.mrb[0].mxu1 %vm613_vm1, %v585_v15  ;;  %p2118_p4 = pnand %p2117_p7, %p2891_p12  ;;  %s2120_s7 = sshll.u32 %s2225_s1, 4  ;;  %s2121_s7 = int_to_ptr.vmem [resolvable:$false] %s2120_s7 }
 0x168   : > { %1564 = vmatmul.mubr.msk.bf16.vlgmr.msra.gmra.mrb[0].mxu0 %vm613_vm1, %v583_v16  ;;  %1585 = vmatprep.mubr.msk.bf16.mxu1 %vm2218_vm0, %v2217_v0  ;;  %s2122_s29 = scalar_lea.vmem %s2121_s7, 256  ;;  %p2123_p2 = scmp.lt.s32.totalorder %s2771_s26, %s2121_s7 }
 0x169   : > { %1579 = vmatprep.mubr.msk.bf16.mxu0 %vm2218_vm0, %v2217_v0  ;;  %1576 = vmatpush3.bf16.msra.mxu0 %v604_v36  ;;  %s2769_s27 = scalar_lea.hbm %s2890_s16, %s1528_s13  ;;  %p2119_p10 = pneg %p2118_p4 }
 0x16a   : > { %1577 = vmatprep.subr.bf16.mxu0 %v2217_v0  ;;  %p2124_p1 = scmp.lt.s32.totalorder %s2122_s29, %s2116_s22 }
 0x16c   : > { %p2125_p13 = por %p2124_p1, %p2123_p2 }
 0x16d   : > { %1578 = vmatpush3.bf16.msra.mxu0 %v605_v38 }
 0x16e   : > { %1589 = vmatprep.subr.bf16.mxu0 %v2217_v0  ;;  %p2126_p3 = pnand %p2125_p13, %p2119_p10 }
 0x170   : > { %1580 = vmatmul.mubr.msk.bf16.vlgmr.msra.gmra.mrb[4].mxu0 %vm613_vm1, %v587_v40 }
 0x171   : > { %1591 = vmatprep.mubr.msk.bf16.mxu0 %vm2218_vm0, %v2217_v0 }
 0x23a   : > { %v702_v19 = vpop.f32.mrb[0].mxu1 }
 0x23b   : > { %v703_v20 = vadd.f32 %v1513_v17, %v702_v19  ;;  %v1573_v21 = vpop.f32.mrb[1].mxu1  ;;  %v651_v22 = vpop.f32.mrb[0].mxu0 }
 0x23c   : > { %v652_v23 = vadd.f32 %v1511_v18, %v651_v22  ;;  %v705_v24 = vpop.f32.mrb[2].mxu1  ;;  %v1565_v25 = vpop.f32.mrb[1].mxu0 }
 0x23d   : > { %v759_v26 = vpack.c.bf16 %v703_v20, %v703_v20  ;;  %v1574_v27 = vpop.f32.mrb[3].mxu1  ;;  %v654_v28 = vpop.f32.mrb[2].mxu0 }
 0x23e   : > { %v657_v29 = vmul.f32 0.17677669, %v652_v23  ;;  %v1566_v30 = vpop.f32.mrb[3].mxu0 }
 0x23f   : > { %989 = vrot.lane.b32.xlu1 %v759_v26, %s2219_s25  ;;  %872 = vrot.lane.b32.xlu0 %v759_v26, %s2220_s11  ;;  %v766_v31 = vsel %vm761_vm2, %v759_v26, 0 }
 0x240   : > { %v758_v32 = vpack.c.bf16 %v657_v29, %v657_v29  ;;  %1584 = vmatpush3.bf16.xpose.msra.mxu1 %v766_v31 }
 0x241   : > { %1595 = vmatprep.subr.bf16.mxu1 %v2217_v0 }
 0x243   : > { %987 = vrot.lane.b32.xlu1 %v758_v32, %s2219_s25  ;;  %869 = vrot.lane.b32.xlu0 %v758_v32, %s2220_s11  ;;  %v752_v56 = vpop.f32.mrb[4].mxu0 }
 0x244   : > { %v753_v57 = vadd.f32 %v1515_v55, %v752_v56  ;;  %v1581_v58 = vpop.f32.mrb[5].mxu0 }
 0x245   : > { %v755_v59 = vpop.f32.mrb[6].mxu0 }
 0x246   : > { %v760_v60 = vpack.c.bf16 %v753_v57, %v753_v57  ;;  %v1582_v61 = vpop.f32.mrb[7].mxu0 }
 0x247   : > { %1103 = vrot.lane.b32.xlu1 %v758_v32, %s2221_s21  ;;  %1105 = vrot.lane.b32.xlu0 %v759_v26, %s2221_s21 }
 0x248   : > { %1586 = vmatmul.mubr.msk.bf16.vlgmr.msra.gmra.mrb[4].mxu1 %vm761_vm2, %v758_v32  ;;  %v825_v62 = vsel %vm823_vm3, %v760_v60, 0 }
 0x249   : > { %1597 = vmatprep.mubr.msk.bf16.mxu1 %vm2218_vm0, %v2217_v0  ;;  %1590 = vmatpush3.bf16.msra.mxu0 %v825_v62 }
 0x24a   : > { %1601 = vmatprep.subr.bf16.mxu0 %v2217_v0 }
 0x2b1   : > { %v873_v41 = vpop.permute.xlu0 %872  ;;  %v990_v43 = vpop.permute.xlu1 %989 }
 0x2b2   : > { %v878_v42 = vsel %vm761_vm2, %v873_v41, 0  ;;  %v995_v45 = vsel %vm761_vm2, %v990_v43, 0 }
 0x2b3   : > { %1596 = vmatpush3.bf16.xpose.msra.mxu1 %v878_v42 }
 0x2b4   : > { %1607 = vmatprep.subr.bf16.mxu1 %v2217_v0 }
 0x2b5   : > { %v870_v44 = vpop.permute.xlu0 %869  ;;  %v988_v47 = vpop.permute.xlu1 %987 }
 0x2b9   : > { %v1106_v46 = vpop.permute.xlu0 %1105  ;;  %v1104_v49 = vpop.permute.xlu1 %1103 }
 0x2ba   : > { %1598 = vmatmul.mubr.msk.bf16.vlgmr.msra.gmra.mrb[8].mxu1 %vm761_vm2, %v870_v44  ;;  %v1111_v48 = vsel %vm761_vm2, %v1106_v46, 0 }
 0x2bb   : > { %1608 = vmatpush3.bf16.xpose.msra.mxu1 %v995_v45  ;;  %1609 = vmatprep.mubr.msk.bf16.mxu1 %vm2218_vm0, %v2217_v0 }
 0x2bc   : > { %1619 = vmatprep.subr.bf16.mxu1 %v2217_v0 }
 0x2c2   : > { %1610 = vmatmul.mubr.msk.bf16.vlgmr.msra.gmra.mrb[12].mxu1 %vm761_vm2, %v988_v47 }
 0x2c3   : > { %1620 = vmatpush3.bf16.xpose.msra.mxu1 %v1111_v48  ;;  %1621 = vmatprep.mubr.msk.bf16.mxu1 %vm2218_vm0, %v2217_v0 }
 0x2c4   : > { %1631 = vmatprep.subr.bf16.mxu1 %v2217_v0 }
 0x2ca   : > { %1622 = vmatmul.mubr.msk.bf16.vlgmr.msra.gmra.mrb[16].mxu1 %vm761_vm2, %v1104_v49 }
 0x2cb   : > { %1635 = vmatprep.mubr.msk.bf16.mxu1 %vm2218_vm0, %v2217_v0 }
 0x31b   : > { %v802_v50 = vpop.f32.mrb[4].mxu1 }
 0x31c   : > { %v1587_v51 = vpop.f32.mrb[5].mxu1  ;;  %v808_v52 = vsel %vm761_vm2, %v802_v50, -inf }
 0x31d   : > { %809 = vmax.xlane.f32.xlu0 %v808_v52  ;;  %v805_v53 = vpop.f32.mrb[6].mxu1 }
 0x31e   : > { %v1588_v54 = vpop.f32.mrb[7].mxu1 }
 0x38d   : > { %v914_v63 = vpop.f32.mrb[8].mxu1 }
 0x38e   : > { %v1599_v1 = vpop.f32.mrb[9].mxu1  ;;  %v920_v2 = vsel %vm761_vm2, %v914_v63, -inf }
 0x38f   : > { %921 = vmax.xlane.f32.xlu1 %v920_v2  ;;  %v917_v3 = vpop.f32.mrb[10].mxu1  ;;  %v1221_v2 = vld [vmem:[#allocation18] sm:$0xff] }
 0x390   : > { %v1600_v4 = vpop.f32.mrb[11].mxu1  ;;  %v1222_v3 = vld [vmem:[#allocation18 + $0x8] sm:$0xff] }
 0x391   : > { %v1223_v4 = vld [vmem:[#allocation18 + $0x10] sm:$0xff] }
 0x395   : > { %v1031_v5 = vpop.f32.mrb[12].mxu1 }
 0x396   : > { %v1611_v6 = vpop.f32.mrb[13].mxu1  ;;  %v1037_v7 = vsel %vm761_vm2, %v1031_v5, -inf }
 0x397   : > { %1038 = vmax.xlane.f32.xlu0 %v1037_v7  ;;  %v1034_v8 = vpop.f32.mrb[14].mxu1  ;;  %v1224_v6 = vld [vmem:[#allocation18 + $0x18] sm:$0xff] }
 0x398   : > { %v1612_v9 = vpop.f32.mrb[15].mxu1  ;;  %v1226_v7 = vpack.c.bf16 %v1224_v6, %v1223_v4 }
 0x39d   : > { %v1147_v10 = vpop.f32.mrb[16].mxu1 }
 0x39e   : > { %v1623_v11 = vpop.f32.mrb[17].mxu1  ;;  %v1153_v12 = vsel %vm761_vm2, %v1147_v10, -inf }
 0x39f   : > { %1154 = vmax.xlane.f32.xlu0 %v1153_v12  ;;  %v1150_v13 = vpop.f32.mrb[18].mxu1 }
 0x3a0   : > { %v1624_v14 = vpop.f32.mrb[19].mxu1 }
 0x3aa   : > { %v810_v15 = vpop.xlane.xlu0 %809 }
 0x3ab   : > { %v811_v16 = vsub.f32 %v802_v50, %v810_v15 }
 0x3ad   : > { %v812_v17 = vmul.f32 1.442695, %v811_v16 }
 0x3af   : > { %1786 = vpow2.f32 %v812_v17 }
 0x3b9   : > { %v1787_v18 = vpop.eup %1786 }
 0x3ba   : > { %v814_v19 = vsel %vm761_vm2, %v1787_v18, 0.0 }
 0x3bb   : > { %815 = vadd.xlane.f32.xlu1 %v814_v19 }
 0x3cc   : > { %933 = vrot.lane.b32.xlu1 %v760_v60, %s2220_s11 }
 0x41c   : > { %v922_v20 = vpop.xlane.xlu1 %921 }
 0x41d   : > { %v923_v21 = vsub.f32 %v914_v63, %v922_v20  ;;  %v1525_v20 = vld [vmem:[#allocation20] ss:$0 sm:$0xff] }
 0x41f   : > { %v924_v22 = vmul.f32 1.442695, %v923_v21 }
 0x421   : > { %1788 = vpow2.f32 %v924_v22 }
 0x424   : > { %v1039_v23 = vpop.xlane.xlu0 %1038 }
 0x425   : > { %v1040_v24 = vsub.f32 %v1031_v5, %v1039_v23  ;;  %v1225_v5 = vpack.c.bf16 %v1222_v3, %v1221_v2 }
 0x427   : > { %v1041_v25 = vmul.f32 1.442695, %v1040_v24  ;;  %1632 = vmatpush3.bf16.msra.mxu1 %v1225_v5 }
 0x428   : > { %1633 = vmatprep.subr.bf16.mxu1 %v2217_v0 }
 0x429   : > { %1790 = vpow2.f32 %v1041_v25 }
 0x42b   : > { %v1789_v26 = vpop.eup %1788  ;;  %1634 = vmatpush3.bf16.msra.mxu1 %v1226_v7 }
 0x42c   : > { %v1155_v27 = vpop.xlane.xlu0 %1154  ;;  %v926_v28 = vsel %vm761_vm2, %v1789_v26, 0.0 }
 0x42d   : > { %v1156_v29 = vsub.f32 %v1147_v10, %v1155_v27  ;;  %927 = vadd.xlane.f32.xlu0 %v926_v28 }
 0x42f   : > { %v1157_v30 = vmul.f32 1.442695, %v1156_v29 }
 0x431   : > { %1792 = vpow2.f32 %v1157_v30 }
 0x433   : > { %v1791_v31 = vpop.eup %1790 }
 0x434   : > { %v1043_v32 = vsel %vm761_vm2, %v1791_v31, 0.0 }
 0x435   : > { %1044 = vadd.xlane.f32.xlu1 %v1043_v32 }
 0x43b   : > { %v1793_v33 = vpop.eup %1792 }
 0x43c   : > { %v1159_v34 = vsel %vm761_vm2, %v1793_v33, 0.0 }
 0x43d   : > { %1160 = vadd.xlane.f32.xlu0 %v1159_v34 }
 0x446   : > { %1165 = vrot.lane.b32.xlu1 %v760_v60, %s2221_s21 }
 0x448   : > { %v816_v35 = vpop.xlane.xlu1 %815 }
 0x449   : > { %1794 = vrcp.f32 %v816_v35 }
 0x44c   : > { %v934_v37 = vpop.permute.xlu1 %933 }
 0x44d   : > { %v939_v40 = vsel %vm823_vm3, %v934_v37, 0 }
 0x453   : > { %v1795_v36 = vpop.eup %1794  ;;  %1049 = vrot.lane.b32.xlu0 %v760_v60, %s2219_s25 }
 0x454   : > { %v818_v38 = vmul.f32 %v1795_v36, %v1787_v18 }
 0x456   : > { %v819_v39 = vpack.c.bf16 %v818_v38, %v818_v38 }
 0x458   : > { %1592 = vmatmul.mubr.msk.bf16.vlgmr.msra.gmra.mrb[8].mxu0 %vm761_vm2, %v819_v39 }
 0x459   : > { %1602 = vmatpush3.bf16.msra.mxu0 %v939_v40  ;;  %1603 = vmatprep.mubr.msk.bf16.mxu0 %vm2218_vm0, %v2217_v0 }
 0x45a   : > { %1613 = vmatprep.subr.bf16.mxu0 %v2217_v0 }
 0x4ba   : > { %v928_v41 = vpop.xlane.xlu0 %927 }
 0x4bb   : > { %1796 = vrcp.f32 %v928_v41 }
 0x4c2   : > { %v1045_v42 = vpop.xlane.xlu1 %1044 }
 0x4c3   : > { %1798 = vrcp.f32 %v1045_v42 }
 0x4c5   : > { %v1797_v43 = vpop.eup %1796 }
 0x4c6   : > { %v930_v44 = vmul.f32 %v1797_v43, %v1789_v26  ;;  %v1166_v51 = vpop.permute.xlu1 %1165 }
 0x4c7   : > { %v1171_v53 = vsel %vm823_vm3, %v1166_v51, 0 }
 0x4c8   : > { %v931_v45 = vpack.c.bf16 %v930_v44, %v930_v44 }
 0x4ca   : > { %v1161_v46 = vpop.xlane.xlu0 %1160  ;;  %1604 = vmatmul.mubr.msk.bf16.vlgmr.msra.gmra.mrb[12].mxu0 %vm761_vm2, %v931_v45 }
 0x4cb   : > { %1800 = vrcp.f32 %v1161_v46  ;;  %1615 = vmatprep.mubr.msk.bf16.mxu0 %vm2218_vm0, %v2217_v0 }
 0x4cd   : > { %v1799_v47 = vpop.eup %1798 }
 0x4ce   : > { %v1047_v48 = vmul.f32 %v1799_v47, %v1791_v31  ;;  %v1050_v49 = vpop.permute.xlu0 %1049 }
 0x4cf   : > { %v1055_v50 = vsel %vm823_vm3, %v1050_v49, 0 }
 0x4d0   : > { %1614 = vmatpush3.bf16.msra.mxu0 %v1055_v50  ;;  %v1048_v52 = vpack.c.bf16 %v1047_v48, %v1047_v48 }
 0x4d1   : > { %1625 = vmatprep.subr.bf16.mxu0 %v2217_v0 }
 0x4d3   : > { %1616 = vmatmul.mubr.msk.bf16.vlgmr.msra.gmra.mrb[16].mxu0 %vm761_vm2, %v1048_v52 }
 0x4d4   : > { %1626 = vmatpush3.bf16.msra.mxu0 %v1171_v53  ;;  %1627 = vmatprep.mubr.msk.bf16.mxu0 %vm2218_vm0, %v2217_v0 }
 0x4d5   : > { %v1801_v54 = vpop.eup %1800 }
 0x4d6   : > { %v1163_v55 = vmul.f32 %v1801_v54, %v1793_v33 }
 0x4d8   : > { %v1164_v56 = vpack.c.bf16 %v1163_v55, %v1163_v55 }
 0x4db   : > { %1628 = vmatmul.mubr.msk.bf16.vlgmr.msra.gmra.mrb[20].mxu0 %vm761_vm2, %v1164_v56 }
 0x52b   : > { %v861_v57 = vpop.f32.mrb[8].mxu0 }
 0x52c   : > { %867 = vst.msk [vmem:[#allocation2] sm:$0xff] %vm761_vm2, %v861_v57  ;;  %v1593_v58 = vpop.f32.mrb[9].mxu0 }
 0x52d   : > { %v864_v59 = vpop.f32.mrb[10].mxu0 }
 0x52e   : > { %v1594_v60 = vpop.f32.mrb[11].mxu0 }
 0x59d   : > { %v975_v61 = vpop.f32.mrb[12].mxu0 }
 0x59e   : > { %982 = vrot.lane.b32.xlu1 %v975_v61, %s2222_s14  ;;  %v1605_v62 = vpop.f32.mrb[13].mxu0 }
 0x59f   : > { %v978_v63 = vpop.f32.mrb[14].mxu0 }
 0x5a0   : > { %v1606_v1 = vpop.f32.mrb[15].mxu0 }
 0x5a6   : > { %v1091_v8 = vpop.f32.mrb[16].mxu0 }
 0x5a7   : > { %1098 = vrot.lane.b32.xlu0 %v1091_v8, %s2223_s24  ;;  %v1617_v9 = vpop.f32.mrb[17].mxu0 }
 0x5a8   : > { %v1094_v10 = vpop.f32.mrb[18].mxu0 }
 0x5a9   : > { %v1618_v11 = vpop.f32.mrb[19].mxu0 }
 0x5ae   : > { %v1207_v12 = vpop.f32.mrb[20].mxu0 }
 0x5af   : > { %1214 = vrot.lane.b32.xlu1 %v1207_v12, %s2224_s15  ;;  %v1629_v13 = vpop.f32.mrb[21].mxu0 }
 0x5b0   : > { %v1210_v14 = vpop.f32.mrb[22].mxu0 }
 0x5b1   : > { %v1630_v15 = vpop.f32.mrb[23].mxu0 }
 0x610   : > { %v983_v16 = vpop.permute.xlu1 %982 }
 0x611   : > { %986 = vst.msk [vmem:[#allocation2] sm:$0xff] %vm985_vm4, %v983_v16 }
 0x619   : > { %v1099_v17 = vpop.permute.xlu0 %1098 }
 0x61a   : > { %1102 = vst.msk [vmem:[#allocation2] sm:$0xff] %vm1101_vm5, %v1099_v17 }
 0x621   : > { %v1215_v0 = vpop.permute.xlu1 %1214 }
 0x622   : > { %1218 = vst.msk [vmem:[#allocation2] sm:$0xff] %vm1217_vm6, %v1215_v0 }
 0x629   : > { %v1219_v18 = vld [vmem:[#allocation2] sm:$0xff] }
 0x62a   : > { %v1220_v19 = vpack.c.bf16 %v1219_v18, %v1219_v18 }
 0x62c   : > { %1636 = vmatmul.mubr.msk.bf16.vlgmr.msra.gmra.mrb[20].mxu1 %vm613_vm1, %v1220_v19 }
 0x6ff   : > { %v1271_v21 = vpop.f32.mrb[20].mxu1 }
 0x700   : > { %v1272_v22 = vadd.f32 %v1525_v20, %v1271_v21  ;;  %v1637_v23 = vpop.f32.mrb[21].mxu1 }
 0x701   : > { %v1274_v24 = vpop.f32.mrb[22].mxu1 }
 0x702   : > { %v1638_v25 = vpop.f32.mrb[23].mxu1  ;;  %1277 = vst.msk [vmem:[%s580_s28] sm:$0xff] %vm613_vm1, %v1272_v22 }
 0x703   : > { %2129 = shalt.err (!%p2126_p3)
}
 0x704   : > { %s2130_s2 = scalar_lea.hbm %s2769_s27, 128  ;;  %s2134_s25 = scalar_lea.hbm %s2890_s16, 256 }
 0x705   : > { %p2131_p0 = scmp.ne.s32.totalorder %s2769_s27, %s2130_s2  ;;  %p2135_p6 = scmp.lt.u32.totalorder %s2769_s27, %s2890_s16 }
 0x706   : > { %p2136_p8 = scmp.lt.u32.totalorder %s2134_s25, %s2130_s2  ;;  %p2138_p7 = scmp.lt.u32.totalorder %s2130_s2, %s2769_s27 }
 0x707   : > { %p2132_p5 = pnand %p2131_p0, %p2891_p12 }
 0x708   : > { %p2137_p11 = por %p2136_p8, %p2135_p6 }
 0x709   : > { %p2133_p9 = pneg %p2132_p5 }
 0x70a   : > { %p2139_p4 = por %p2138_p7, %p2137_p11 }
 0x70c   : > { %p2140_p10 = pnand %p2139_p4, %p2133_p9 }
 0x70e   : > { %2143 = shalt.err (!%p2140_p10)
}
 0x70f   : > { %1677 = dma.vmem_to_hbm [thread:$0]  (%p2891_p12), %s2771_s26, 128, %s2769_s27, %s1279_s23  }
 0x710 PF: > { %s2892_s14 = sld [smem:[#allocation33_spill]]  ;;  %s2893_s24 = sld [smem:[#allocation29_spill]] }
 0x711   : > { %s1304_s15 = sand.u32 1, %s2190_s17  }
 0x712   : > { %s1305_s13 = scalar_lea.sflag [#allocation5], %s1304_s15 }
 0x716   : > { %p2894_p2 = scmp.ne.s32.totalorder %s2892_s14, 0  ;;  %p2895_p1 = scmp.ge.s32.totalorder %s2893_s24, 2 }
 0x718   : > { %p1715_p13 = pnand %p2895_p1, %p2894_p2 }
 0x71a   : > { %2185 = dma.done.wait (!%p1715_p13), %s1305_s13, 128  }
 0x71b   : > { %2187 = vsyncadd (!%p1715_p13), %s1305_s13, 4294967168  ;;  %s2896_s20 = sld [smem:[#allocation31_spill]]  ;;  %s2897_s28 = sld [smem:[#allocation32_spill]] }
 0x71c   : > { %s2898_s17 = smov %s2194_s18  ;;  %s2899_s18 = smov %s2198_s19 }
 0x721   : > { %p31_p3 = scmp.ge.s32.totalorder %s2896_s20, 4   ;;  %s2900_s19 = smov %s2897_s28 }
 0x723   :  { %33 = sbr.rel (!%p31_p3) target bundleno = 19 (0x13), region = 165 }
 0x72a   :  { %1310 = vsyncpa [#allocation4], 1 }
 0x72b   :  { %1312 = vsyncpa [#allocation4 + $0x1], 1 }
 0x72c   :  { %1313 = vsyncpa [#allocation7], 1 }
 0x72d   :  { %1315 = vsyncpa [#allocation7 + $0x1], 1 }
 0x72e   :  { %1316 = vsyncpa [#allocation10], 1 }
 0x72f   :  { %1317 = vsyncpa [#allocation13], 1 }
 0x730   :  { %1318 = vsyncpa [#allocation16], 1 }
 0x731   :  { %1319 = vsyncpa [#allocation19], 1 }
 0x732   :  { %1320 = vsyncpa [#allocation5], 1 }
 0x733   :  { %1322 = vsyncpa [#allocation5 + $0x1], 1 }

</bundles_post_ra>
